<compile_context>
chip_gen: v7x
topology: tpu7x:2x2x1
jax: 0.10.0
libtpu: 0.0.40
codegen_flags: <defaults>
</compile_context>

<pallas_src>
import functools

import numpy as np
import jax
import jax.numpy as jnp
from jax.experimental import pallas as pl
from jax.experimental.pallas import tpu as pltpu

KSIZE = 3
N_SLOTS = 10  # c11,r11,x1, c21,r21,x2, c31,r31,x3, final


# ----------------------------------------------------------------------------
# Weight preparation (host-side numpy, run ONCE per parameter set).
#
# Fold a 3x3 dilated conv into a single matmul with K = 3*W*Cin:
#   out_flat[h] = [x_flat[h-d] | x_flat[h] | x_flat[h+d]] @ vstack([B0, B1, B2])
# where x_flat is the activation flattened as (H, W*Cin), the W-direction 'same'
# padding is encoded in the band structure of B_kh, and the H-direction padding is
# done in-kernel by masked row shifts.
# ----------------------------------------------------------------------------
def _banded_stacked(w_oihw, d, W):
    w = np.asarray(w_oihw, dtype=np.float32)                 # (Cout, Cin, 3, 3)
    Cout, Cin, KH, KW = w.shape
    wm = np.transpose(w, (2, 3, 1, 0))                       # (KH, KW, Cin, Cout)
    bands = []
    for kh in range(KH):
        b = np.zeros((W * Cin, W * Cout), np.float32)
        for kw in range(KW):
            # shift[w_in, w_out] = 1 iff w_in == w_out + (kw-1)*d; zeros outside
            # [0, W) implement the W-direction 'same' padding.
            shift = np.eye(W, k=-(kw - 1) * d, dtype=np.float32)
            b += (shift[:, None, :, None] * wm[kh, kw][None, :, None, :]
                  ).reshape(W * Cin, W * Cout)
        bands.append(b)
    return jnp.asarray(np.concatenate(bands, axis=0))        # (3*W*Cin, W*Cout)


def make_banded_weights(params, W, d=(1, 2, 5)):
    """Build the 6 stacked banded weight matrices once (call at param-creation time)."""
    w11, w12 = params['convD1']
    w21, w22 = params['convD2']
    w31, w32 = params['convD3']
    return (_banded_stacked(w11, d[0], W), _banded_stacked(w12, d[0], W),
            _banded_stacked(w21, d[1], W), _banded_stacked(w22, d[1], W),
            _banded_stacked(w31, d[2], W), _banded_stacked(w32, d[2], W))


# ----------------------------------------------------------------------------
# The single fused kernel.
# Activations live as (M, W*C) with M = (images-in-this-block) * H rows.
# ----------------------------------------------------------------------------
def _make_fused_kernel(H, d):
    def kernel(x_ref, w11_ref, w12_ref, w21_ref, w22_ref, w31_ref, w32_ref,
               out_ref):
        x = x_ref[...]                                        # (M, W*C) f32
        M, WC = x.shape
        # Per-row "height within image" index; images are stacked along rows.
        row = jax.lax.broadcasted_iota(jnp.int32, (M, WC), 0) % H

        def shift_rows(t, offset):
            # out[r] = t[r + offset] when row r+offset lies inside the same image,
            # else 0  (H-direction 'same' padding + per-image boundary handling).
            rolled = jnp.roll(t, -offset, axis=0)             # static sublane rotate
            ok = (row < H - offset) if offset > 0 else (row >= -offset)
            return jnp.where(ok, rolled, 0.0)

        def conv(t, w_ref, dd):
            # One MXU matmul with K = 3*W*Cin: taps at h-dd / h / h+dd are
            # lane-concatenated; the per-kh banded matrices are stacked in w_ref.
            lhs = jnp.concatenate([shift_rows(t, -dd), t, shift_rows(t, dd)], axis=1)
            return jnp.dot(lhs, w_ref[...], preferred_element_type=jnp.float32)

        # --- convD1: conv -> ReLU -> conv (no ReLU on the block input) ---
        c11 = conv(x, w11_ref, d[0])
        r11 = jnp.maximum(c11, 0.0)
        x1 = conv(r11, w12_ref, d[0])

        # --- convD2 on relu(x + x1) ---
        s2 = x + x1
        c21 = conv(jnp.maximum(s2, 0.0), w21_ref, d[1])
        r21 = jnp.maximum(c21, 0.0)
        x2 = conv(r21, w22_ref, d[1])

        # --- convD3 on relu(x + x1 + x2) ---
        s3 = s2 + x2
        c31 = conv(jnp.maximum(s3, 0.0), w31_ref, d[2])
        r31 = jnp.maximum(c31, 0.0)
        x3 = conv(r31, w32_ref, d[2])

        final = jnp.maximum(s3 + x3, 0.0)                     # relu(x+x1+x2+x3)

        # Single lane-dense store: 10 slots * 64 lanes = 640 = 5*128 lanes.
        out_ref[...] = jnp.concatenate(
            [c11, r11, x1, c21, r21, x2, c31, r31, x3, final], axis=1
        ).astype(out_ref.dtype)

    return kernel


def _fused_ddrb(xf, bands, *, N, H, WC, WCm, d, batch_blocks):
    M = N * H
    Mb = M // batch_blocks                                    # rows per grid step

    act_spec = pl.BlockSpec((Mb, WC), lambda i: (i, 0))
    w_spec = pl.BlockSpec((3 * WC, WCm), lambda i: (0, 0))
    out_spec = pl.BlockSpec((Mb, N_SLOTS * WCm), lambda i: (i, 0))

    return pl.pallas_call(
        _make_fused_kernel(H, d),
        out_shape=jax.ShapeDtypeStruct((M, N_SLOTS * WCm), jnp.float32),
        grid=(batch_blocks,),
        in_specs=[act_spec] + [w_spec] * 6,
        out_specs=out_spec,
        compiler_params=pltpu.CompilerParams(
            dimension_semantics=("parallel",),               # lets v7x use both TCs
        ),
    )(xf, *bands)


# ----------------------------------------------------------------------------
# Forward (matches DDRB_Traceable.forward semantics, incl. feature dict).
# ----------------------------------------------------------------------------
def init_params(key, in_channels=4, mid_channels=4):
    keys = jax.random.split(key, 6)

    def w(k, co, ci):
        return jax.random.normal(k, (co, ci, KSIZE, KSIZE), jnp.float32) * 0.1

    return {
        'convD1': (w(keys[0], mid_channels, in_channels), w(keys[1], mid_channels, mid_channels)),
        'convD2': (w(keys[2], mid_channels, in_channels), w(keys[3], mid_channels, mid_channels)),
        'convD3': (w(keys[4], mid_channels, in_channels), w(keys[5], mid_channels, mid_channels)),
    }


@functools.partial(jax.jit, static_argnames=("d", "batch_blocks"))
def _ddrb_core(x_nchw, bands, d=(1, 2, 5), batch_blocks=1):
    N, C, H, W = x_nchw.shape
    WC = W * C
    WCm = bands[0].shape[1]
    Cm = WCm // W
    assert Cm == C, "residual adds require in_channels == mid_channels"
    assert all(b.shape == (3 * WC, WCm) for b in bands)
    assert N % batch_blocks == 0

    xf = jnp.transpose(x_nchw, (0, 2, 3, 1)).reshape(N * H, WC)   # NCHW -> (N*H, W*C)
    slab = _fused_ddrb(xf, bands, N=N, H=H, WC=WC, WCm=WCm, d=d,
                       batch_blocks=batch_blocks)
    out = jnp.transpose(slab[:, 9 * WCm:10 * WCm].reshape(N, H, W, Cm), (0, 3, 1, 2))
    return out, slab


def ddrb_forward(x_nchw, params, d=(1, 2, 5), bands=None, batch_blocks=1):
    """Returns (output [NCHW device array], features dict) like DDRB_Traceable.forward.

    Pass `bands = make_banded_weights(params, W, d)` to hoist the (host-side) weight
    preparation out of the hot path.  All device compute is one fused pallas_call.
    """
    N, C, H, W = x_nchw.shape
    if bands is None:
        bands = make_banded_weights(params, W, d)
    out, slab = _ddrb_core(x_nchw, bands, d=tuple(d), batch_blocks=batch_blocks)

    WCm = bands[0].shape[1]
    Cm = WCm // W
    slab_h = np.asarray(slab)          # one D2H copy for all traced tensors

    def piece(k):                      # host-side split + NHWC->NCHW (free vs device)
        a = slab_h[:, k * WCm:(k + 1) * WCm].reshape(N, H, W, Cm)
        return np.ascontiguousarray(np.transpose(a, (0, 3, 1, 2)))

    w11, w12 = params['convD1']
    w21, w22 = params['convD2']
    w31, w32 = params['convD3']
    features = {
        'input': np.asarray(x_nchw),
        'convD1_layer0_output': piece(0), 'convD1_layer0_weight': np.asarray(w11),
        'convD1_layer1_output': piece(1),
        'convD1_layer2_output': piece(2), 'convD1_layer2_weight': np.asarray(w12),
        'convD2_layer0_output': piece(3), 'convD2_layer0_weight': np.asarray(w21),
        'convD2_layer1_output': piece(4),
        'convD2_layer2_output': piece(5), 'convD2_layer2_weight': np.asarray(w22),
        'convD3_layer0_output': piece(6), 'convD3_layer0_weight': np.asarray(w31),
        'convD3_layer1_output': piece(7),
        'convD3_layer2_output': piece(8), 'convD3_layer2_weight': np.asarray(w32),
        'output': np.asarray(out),
    }
    return out, features


# ----------------------------------------------------------------------------
# Pure-JAX reference (for correctness check)
# ----------------------------------------------------------------------------
def _ref_conv(x_nchw, w, dd):
    return jax.lax.conv_general_dilated(
        x_nchw, w, window_strides=(1, 1), padding=[(dd, dd), (dd, dd)],
        rhs_dilation=(dd, dd), dimension_numbers=('NCHW', 'OIHW', 'NCHW'))


def ref_forward(x, params, d=(1, 2, 5)):
    inter = {}

    def branch(xin, ws, dd, name):
        w1, w2 = ws
        c1 = _ref_conv(xin, w1, dd)
        r1 = jax.nn.relu(c1)
        c2 = _ref_conv(r1, w2, dd)
        inter[f'{name}_layer0_output'] = c1
        inter[f'{name}_layer1_output'] = r1
        inter[f'{name}_layer2_output'] = c2
        return c2

    x1 = branch(x, params['convD1'], d[0], 'convD1')
    x2 = branch(jax.nn.relu(x + x1), params['convD2'], d[1], 'convD2')
    x3 = branch(jax.nn.relu(x + x1 + x2), params['convD3'], d[2], 'convD3')
    return jax.nn.relu(x + x1 + x2 + x3), inter


if __name__ == "__main__":
    key = jax.random.PRNGKey(0)
    k_x, k_p = jax.random.split(key)

    # Small shapes consistent with the module defaults: in_channels = mid_channels = 4.
    N, C, H, W = 2, 4, 16, 16
    x = jax.random.normal(k_x, (N, C, H, W), jnp.float32)
    params = init_params(k_p, in_channels=C, mid_channels=C)

    # Banded/stacked weights built once, reused across forwards.
    bands = make_banded_weights(params, W, d=(1, 2, 5))

    out, features = ddrb_forward(x, params, d=(1, 2, 5), bands=bands, batch_blocks=1)
    out = jax.block_until_ready(out)

    ref_out, ref_inter = ref_forward(x, params)
    ref_out = jax.block_until_ready(ref_out)

    assert out.shape == (N, C, H, W)
    np.testing.assert_allclose(np.asarray(out), np.asarray(ref_out), rtol=1e-4, atol=1e-4)
    for name in ('convD1_layer0_output', 'convD1_layer1_output', 'convD1_layer2_output',
                 'convD2_layer0_output', 'convD2_layer1_output', 'convD2_layer2_output',
                 'convD3_layer0_output', 'convD3_layer1_output', 'convD3_layer2_output'):
        np.testing.assert_allclose(features[name], np.asarray(ref_inter[name]),
                                   rtol=1e-4, atol=1e-4)
    np.testing.assert_allclose(features['output'], np.asarray(ref_out),
                               rtol=1e-4, atol=1e-4)

    print("KERNEL_OK")
</pallas_src>

<mosaic_0001>
module attributes {stable_mosaic.version = 11 : i64} {
  func.func @kernel(%arg0: i32, %arg1: memref<32x64xf32, #tpu.memory_space<vmem>>, %arg2: memref<192x64xf32, #tpu.memory_space<vmem>>, %arg3: memref<192x64xf32, #tpu.memory_space<vmem>>, %arg4: memref<192x64xf32, #tpu.memory_space<vmem>>, %arg5: memref<192x64xf32, #tpu.memory_space<vmem>>, %arg6: memref<192x64xf32, #tpu.memory_space<vmem>>, %arg7: memref<192x64xf32, #tpu.memory_space<vmem>>, %arg8: memref<32x640xf32, #tpu.memory_space<vmem>>) attributes {dimension_semantics = [#tpu.dimension_semantics<parallel>], iteration_bounds = array<i64: 1>, scalar_prefetch = 0 : i64, scratch_operands = 0 : i64, tpu.core_type = #tpu.core_type<tc>, window_params = [{transform_indices = @transform_0, window_bounds = array<i64: 32, 64>}, {pipeline_mode = #tpu.pipeline_mode<synchronous>, transform_indices = @transform_1, window_bounds = array<i64: 192, 64>}, {pipeline_mode = #tpu.pipeline_mode<synchronous>, transform_indices = @transform_2, window_bounds = array<i64: 192, 64>}, {pipeline_mode = #tpu.pipeline_mode<synchronous>, transform_indices = @transform_3, window_bounds = array<i64: 192, 64>}, {pipeline_mode = #tpu.pipeline_mode<synchronous>, transform_indices = @transform_4, window_bounds = array<i64: 192, 64>}, {pipeline_mode = #tpu.pipeline_mode<synchronous>, transform_indices = @transform_5, window_bounds = array<i64: 192, 64>}, {pipeline_mode = #tpu.pipeline_mode<synchronous>, transform_indices = @transform_6, window_bounds = array<i64: 192, 64>}, {transform_indices = @transform_7, window_bounds = array<i64: 32, 640>}]} {
    %c0 = arith.constant 0 : index
    %c0_0 = arith.constant 0 : index
    %0 = vector.load %arg1[%c0, %c0_0] : memref<32x64xf32, #tpu.memory_space<vmem>>, vector<32x64xf32>
    %1 = tpu.iota {dimensions = array<i32: 0>} : vector<32x64xi32>
    %c16_i32 = arith.constant 16 : i32
    %c0_i32 = arith.constant 0 : i32
    %2 = arith.cmpi eq, %c16_i32, %c0_i32 : i32
    %c1_i32 = arith.constant 1 : i32
    %3 = arith.select %2, %c1_i32, %c16_i32 : i32
    %4 = vector.broadcast %3 : i32 to vector<32x64xi32>
    %5 = arith.remsi %1, %4 : vector<32x64xi32>
    %c0_i32_1 = arith.constant 0 : i32
    %6 = vector.broadcast %c0_i32_1 : i32 to vector<32x64xi32>
    %7 = arith.cmpi ne, %5, %6 : vector<32x64xi32>
    %c0_i32_2 = arith.constant 0 : i32
    %8 = vector.broadcast %c0_i32_2 : i32 to vector<32x64xi32>
    %9 = arith.cmpi slt, %5, %8 : vector<32x64xi32>
    %c0_i32_3 = arith.constant 0 : i32
    %10 = arith.cmpi slt, %3, %c0_i32_3 : i32
    %11 = vector.broadcast %10 : i1 to vector<32x64xi1>
    %12 = vector.broadcast %11 : vector<32x64xi1> to vector<32x64xi1>
    %13 = arith.xori %9, %12 : vector<32x64xi1>
    %14 = arith.andi %13, %7 : vector<32x64xi1>
    %15 = vector.broadcast %3 : i32 to vector<32x64xi32>
    %16 = arith.addi %5, %15 : vector<32x64xi32>
    %17 = arith.select %14, %16, %5 : vector<32x64xi1>, vector<32x64xi32>
    %18 = vector.extract_strided_slice %0 {offsets = [31, 0], sizes = [1, 64], strides = [1, 1]} : vector<32x64xf32> to vector<1x64xf32>
    %19 = vector.extract_strided_slice %0 {offsets = [0, 0], sizes = [31, 64], strides = [1, 1]} : vector<32x64xf32> to vector<31x64xf32>
    %20 = tpu.concatenate %18, %19 in 0 : vector<1x64xf32>, vector<31x64xf32> -> vector<32x64xf32>
    %c1_i32_4 = arith.constant 1 : i32
    %21 = vector.broadcast %c1_i32_4 : i32 to vector<32x64xi32>
    %22 = arith.cmpi sge, %17, %21 : vector<32x64xi32>
    %cst = arith.constant 0.000000e+00 : f32
    %23 = vector.broadcast %cst : f32 to vector<32x64xf32>
    %24 = arith.select %22, %20, %23 : vector<32x64xi1>, vector<32x64xf32>
    %25 = vector.extract_strided_slice %0 {offsets = [1, 0], sizes = [31, 64], strides = [1, 1]} : vector<32x64xf32> to vector<31x64xf32>
    %26 = vector.extract_strided_slice %0 {offsets = [0, 0], sizes = [1, 64], strides = [1, 1]} : vector<32x64xf32> to vector<1x64xf32>
    %27 = tpu.concatenate %25, %26 in 0 : vector<31x64xf32>, vector<1x64xf32> -> vector<32x64xf32>
    %c15_i32 = arith.constant 15 : i32
    %28 = vector.broadcast %c15_i32 : i32 to vector<32x64xi32>
    %29 = arith.cmpi slt, %17, %28 : vector<32x64xi32>
    %cst_5 = arith.constant 0.000000e+00 : f32
    %30 = vector.broadcast %cst_5 : f32 to vector<32x64xf32>
    %31 = arith.select %29, %27, %30 : vector<32x64xi1>, vector<32x64xf32>
    %32 = tpu.concatenate %24, %0, %31 in 1 : vector<32x64xf32>, vector<32x64xf32>, vector<32x64xf32> -> vector<32x192xf32>
    %c0_6 = arith.constant 0 : index
    %c0_7 = arith.constant 0 : index
    %33 = vector.load %arg2[%c0_6, %c0_7] : memref<192x64xf32, #tpu.memory_space<vmem>>, vector<192x64xf32>
    %cst_8 = arith.constant dense<0.000000e+00> : vector<32x64xf32>
    %34 = tpu.matmul %32, %33, %cst_8 {dimension_numbers = #tpu.dot_dimension_numbers<[1], [0], [0], [1], [0, 0, 1, 1], [], []>} : vector<32x192xf32>, vector<192x64xf32>, vector<32x64xf32> -> vector<32x64xf32>
    %cst_9 = arith.constant 0.000000e+00 : f32
    %35 = vector.broadcast %cst_9 : f32 to vector<32x64xf32>
    %36 = arith.maximumf %34, %35 : vector<32x64xf32>
    %37 = vector.extract_strided_slice %36 {offsets = [31, 0], sizes = [1, 64], strides = [1, 1]} : vector<32x64xf32> to vector<1x64xf32>
    %38 = vector.extract_strided_slice %36 {offsets = [0, 0], sizes = [31, 64], strides = [1, 1]} : vector<32x64xf32> to vector<31x64xf32>
    %39 = tpu.concatenate %37, %38 in 0 : vector<1x64xf32>, vector<31x64xf32> -> vector<32x64xf32>
    %c1_i32_10 = arith.constant 1 : i32
    %40 = vector.broadcast %c1_i32_10 : i32 to vector<32x64xi32>
    %41 = arith.cmpi sge, %17, %40 : vector<32x64xi32>
    %cst_11 = arith.constant 0.000000e+00 : f32
    %42 = vector.broadcast %cst_11 : f32 to vector<32x64xf32>
    %43 = arith.select %41, %39, %42 : vector<32x64xi1>, vector<32x64xf32>
    %44 = vector.extract_strided_slice %36 {offsets = [1, 0], sizes = [31, 64], strides = [1, 1]} : vector<32x64xf32> to vector<31x64xf32>
    %45 = vector.extract_strided_slice %36 {offsets = [0, 0], sizes = [1, 64], strides = [1, 1]} : vector<32x64xf32> to vector<1x64xf32>
    %46 = tpu.concatenate %44, %45 in 0 : vector<31x64xf32>, vector<1x64xf32> -> vector<32x64xf32>
    %c15_i32_12 = arith.constant 15 : i32
    %47 = vector.broadcast %c15_i32_12 : i32 to vector<32x64xi32>
    %48 = arith.cmpi slt, %17, %47 : vector<32x64xi32>
    %cst_13 = arith.constant 0.000000e+00 : f32
    %49 = vector.broadcast %cst_13 : f32 to vector<32x64xf32>
    %50 = arith.select %48, %46, %49 : vector<32x64xi1>, vector<32x64xf32>
    %51 = tpu.concatenate %43, %36, %50 in 1 : vector<32x64xf32>, vector<32x64xf32>, vector<32x64xf32> -> vector<32x192xf32>
    %c0_14 = arith.constant 0 : index
    %c0_15 = arith.constant 0 : index
    %52 = vector.load %arg3[%c0_14, %c0_15] : memref<192x64xf32, #tpu.memory_space<vmem>>, vector<192x64xf32>
    %cst_16 = arith.constant dense<0.000000e+00> : vector<32x64xf32>
    %53 = tpu.matmul %51, %52, %cst_16 {dimension_numbers = #tpu.dot_dimension_numbers<[1], [0], [0], [1], [0, 0, 1, 1], [], []>} : vector<32x192xf32>, vector<192x64xf32>, vector<32x64xf32> -> vector<32x64xf32>
    %54 = arith.addf %0, %53 : vector<32x64xf32>
    %cst_17 = arith.constant 0.000000e+00 : f32
    %55 = vector.broadcast %cst_17 : f32 to vector<32x64xf32>
    %56 = arith.maximumf %54, %55 : vector<32x64xf32>
    %57 = vector.extract_strided_slice %56 {offsets = [30, 0], sizes = [2, 64], strides = [1, 1]} : vector<32x64xf32> to vector<2x64xf32>
    %58 = vector.extract_strided_slice %56 {offsets = [0, 0], sizes = [30, 64], strides = [1, 1]} : vector<32x64xf32> to vector<30x64xf32>
    %59 = tpu.concatenate %57, %58 in 0 : vector<2x64xf32>, vector<30x64xf32> -> vector<32x64xf32>
    %c2_i32 = arith.constant 2 : i32
    %60 = vector.broadcast %c2_i32 : i32 to vector<32x64xi32>
    %61 = arith.cmpi sge, %17, %60 : vector<32x64xi32>
    %cst_18 = arith.constant 0.000000e+00 : f32
    %62 = vector.broadcast %cst_18 : f32 to vector<32x64xf32>
    %63 = arith.select %61, %59, %62 : vector<32x64xi1>, vector<32x64xf32>
    %64 = vector.extract_strided_slice %56 {offsets = [2, 0], sizes = [30, 64], strides = [1, 1]} : vector<32x64xf32> to vector<30x64xf32>
    %65 = vector.extract_strided_slice %56 {offsets = [0, 0], sizes = [2, 64], strides = [1, 1]} : vector<32x64xf32> to vector<2x64xf32>
    %66 = tpu.concatenate %64, %65 in 0 : vector<30x64xf32>, vector<2x64xf32> -> vector<32x64xf32>
    %c14_i32 = arith.constant 14 : i32
    %67 = vector.broadcast %c14_i32 : i32 to vector<32x64xi32>
    %68 = arith.cmpi slt, %17, %67 : vector<32x64xi32>
    %cst_19 = arith.constant 0.000000e+00 : f32
    %69 = vector.broadcast %cst_19 : f32 to vector<32x64xf32>
    %70 = arith.select %68, %66, %69 : vector<32x64xi1>, vector<32x64xf32>
    %71 = tpu.concatenate %63, %56, %70 in 1 : vector<32x64xf32>, vector<32x64xf32>, vector<32x64xf32> -> vector<32x192xf32>
    %c0_20 = arith.constant 0 : index
    %c0_21 = arith.constant 0 : index
    %72 = vector.load %arg4[%c0_20, %c0_21] : memref<192x64xf32, #tpu.memory_space<vmem>>, vector<192x64xf32>
    %cst_22 = arith.constant dense<0.000000e+00> : vector<32x64xf32>
    %73 = tpu.matmul %71, %72, %cst_22 {dimension_numbers = #tpu.dot_dimension_numbers<[1], [0], [0], [1], [0, 0, 1, 1], [], []>} : vector<32x192xf32>, vector<192x64xf32>, vector<32x64xf32> -> vector<32x64xf32>
    %cst_23 = arith.constant 0.000000e+00 : f32
    %74 = vector.broadcast %cst_23 : f32 to vector<32x64xf32>
    %75 = arith.maximumf %73, %74 : vector<32x64xf32>
    %76 = vector.extract_strided_slice %75 {offsets = [30, 0], sizes = [2, 64], strides = [1, 1]} : vector<32x64xf32> to vector<2x64xf32>
    %77 = vector.extract_strided_slice %75 {offsets = [0, 0], sizes = [30, 64], strides = [1, 1]} : vector<32x64xf32> to vector<30x64xf32>
    %78 = tpu.concatenate %76, %77 in 0 : vector<2x64xf32>, vector<30x64xf32> -> vector<32x64xf32>
    %c2_i32_24 = arith.constant 2 : i32
    %79 = vector.broadcast %c2_i32_24 : i32 to vector<32x64xi32>
    %80 = arith.cmpi sge, %17, %79 : vector<32x64xi32>
    %cst_25 = arith.constant 0.000000e+00 : f32
    %81 = vector.broadcast %cst_25 : f32 to vector<32x64xf32>
    %82 = arith.select %80, %78, %81 : vector<32x64xi1>, vector<32x64xf32>
    %83 = vector.extract_strided_slice %75 {offsets = [2, 0], sizes = [30, 64], strides = [1, 1]} : vector<32x64xf32> to vector<30x64xf32>
    %84 = vector.extract_strided_slice %75 {offsets = [0, 0], sizes = [2, 64], strides = [1, 1]} : vector<32x64xf32> to vector<2x64xf32>
    %85 = tpu.concatenate %83, %84 in 0 : vector<30x64xf32>, vector<2x64xf32> -> vector<32x64xf32>
    %c14_i32_26 = arith.constant 14 : i32
    %86 = vector.broadcast %c14_i32_26 : i32 to vector<32x64xi32>
    %87 = arith.cmpi slt, %17, %86 : vector<32x64xi32>
    %cst_27 = arith.constant 0.000000e+00 : f32
    %88 = vector.broadcast %cst_27 : f32 to vector<32x64xf32>
    %89 = arith.select %87, %85, %88 : vector<32x64xi1>, vector<32x64xf32>
    %90 = tpu.concatenate %82, %75, %89 in 1 : vector<32x64xf32>, vector<32x64xf32>, vector<32x64xf32> -> vector<32x192xf32>
    %c0_28 = arith.constant 0 : index
    %c0_29 = arith.constant 0 : index
    %91 = vector.load %arg5[%c0_28, %c0_29] : memref<192x64xf32, #tpu.memory_space<vmem>>, vector<192x64xf32>
    %cst_30 = arith.constant dense<0.000000e+00> : vector<32x64xf32>
    %92 = tpu.matmul %90, %91, %cst_30 {dimension_numbers = #tpu.dot_dimension_numbers<[1], [0], [0], [1], [0, 0, 1, 1], [], []>} : vector<32x192xf32>, vector<192x64xf32>, vector<32x64xf32> -> vector<32x64xf32>
    %93 = arith.addf %54, %92 : vector<32x64xf32>
    %cst_31 = arith.constant 0.000000e+00 : f32
    %94 = vector.broadcast %cst_31 : f32 to vector<32x64xf32>
    %95 = arith.maximumf %93, %94 : vector<32x64xf32>
    %96 = vector.extract_strided_slice %95 {offsets = [27, 0], sizes = [5, 64], strides = [1, 1]} : vector<32x64xf32> to vector<5x64xf32>
    %97 = vector.extract_strided_slice %95 {offsets = [0, 0], sizes = [27, 64], strides = [1, 1]} : vector<32x64xf32> to vector<27x64xf32>
    %98 = tpu.concatenate %96, %97 in 0 : vector<5x64xf32>, vector<27x64xf32> -> vector<32x64xf32>
    %c5_i32 = arith.constant 5 : i32
    %99 = vector.broadcast %c5_i32 : i32 to vector<32x64xi32>
    %100 = arith.cmpi sge, %17, %99 : vector<32x64xi32>
    %cst_32 = arith.constant 0.000000e+00 : f32
    %101 = vector.broadcast %cst_32 : f32 to vector<32x64xf32>
    %102 = arith.select %100, %98, %101 : vector<32x64xi1>, vector<32x64xf32>
    %103 = vector.extract_strided_slice %95 {offsets = [5, 0], sizes = [27, 64], strides = [1, 1]} : vector<32x64xf32> to vector<27x64xf32>
    %104 = vector.extract_strided_slice %95 {offsets = [0, 0], sizes = [5, 64], strides = [1, 1]} : vector<32x64xf32> to vector<5x64xf32>
    %105 = tpu.concatenate %103, %104 in 0 : vector<27x64xf32>, vector<5x64xf32> -> vector<32x64xf32>
    %c11_i32 = arith.constant 11 : i32
    %106 = vector.broadcast %c11_i32 : i32 to vector<32x64xi32>
    %107 = arith.cmpi slt, %17, %106 : vector<32x64xi32>
    %cst_33 = arith.constant 0.000000e+00 : f32
    %108 = vector.broadcast %cst_33 : f32 to vector<32x64xf32>
    %109 = arith.select %107, %105, %108 : vector<32x64xi1>, vector<32x64xf32>
    %110 = tpu.concatenate %102, %95, %109 in 1 : vector<32x64xf32>, vector<32x64xf32>, vector<32x64xf32> -> vector<32x192xf32>
    %c0_34 = arith.constant 0 : index
    %c0_35 = arith.constant 0 : index
    %111 = vector.load %arg6[%c0_34, %c0_35] : memref<192x64xf32, #tpu.memory_space<vmem>>, vector<192x64xf32>
    %cst_36 = arith.constant dense<0.000000e+00> : vector<32x64xf32>
    %112 = tpu.matmul %110, %111, %cst_36 {dimension_numbers = #tpu.dot_dimension_numbers<[1], [0], [0], [1], [0, 0, 1, 1], [], []>} : vector<32x192xf32>, vector<192x64xf32>, vector<32x64xf32> -> vector<32x64xf32>
    %cst_37 = arith.constant 0.000000e+00 : f32
    %113 = vector.broadcast %cst_37 : f32 to vector<32x64xf32>
    %114 = arith.maximumf %112, %113 : vector<32x64xf32>
    %115 = vector.extract_strided_slice %114 {offsets = [27, 0], sizes = [5, 64], strides = [1, 1]} : vector<32x64xf32> to vector<5x64xf32>
    %116 = vector.extract_strided_slice %114 {offsets = [0, 0], sizes = [27, 64], strides = [1, 1]} : vector<32x64xf32> to vector<27x64xf32>
    %117 = tpu.concatenate %115, %116 in 0 : vector<5x64xf32>, vector<27x64xf32> -> vector<32x64xf32>
    %c5_i32_38 = arith.constant 5 : i32
    %118 = vector.broadcast %c5_i32_38 : i32 to vector<32x64xi32>
    %119 = arith.cmpi sge, %17, %118 : vector<32x64xi32>
    %cst_39 = arith.constant 0.000000e+00 : f32
    %120 = vector.broadcast %cst_39 : f32 to vector<32x64xf32>
    %121 = arith.select %119, %117, %120 : vector<32x64xi1>, vector<32x64xf32>
    %122 = vector.extract_strided_slice %114 {offsets = [5, 0], sizes = [27, 64], strides = [1, 1]} : vector<32x64xf32> to vector<27x64xf32>
    %123 = vector.extract_strided_slice %114 {offsets = [0, 0], sizes = [5, 64], strides = [1, 1]} : vector<32x64xf32> to vector<5x64xf32>
    %124 = tpu.concatenate %122, %123 in 0 : vector<27x64xf32>, vector<5x64xf32> -> vector<32x64xf32>
    %c11_i32_40 = arith.constant 11 : i32
    %125 = vector.broadcast %c11_i32_40 : i32 to vector<32x64xi32>
    %126 = arith.cmpi slt, %17, %125 : vector<32x64xi32>
    %cst_41 = arith.constant 0.000000e+00 : f32
    %127 = vector.broadcast %cst_41 : f32 to vector<32x64xf32>
    %128 = arith.select %126, %124, %127 : vector<32x64xi1>, vector<32x64xf32>
    %129 = tpu.concatenate %121, %114, %128 in 1 : vector<32x64xf32>, vector<32x64xf32>, vector<32x64xf32> -> vector<32x192xf32>
    %c0_42 = arith.constant 0 : index
    %c0_43 = arith.constant 0 : index
    %130 = vector.load %arg7[%c0_42, %c0_43] : memref<192x64xf32, #tpu.memory_space<vmem>>, vector<192x64xf32>
    %cst_44 = arith.constant dense<0.000000e+00> : vector<32x64xf32>
    %131 = tpu.matmul %129, %130, %cst_44 {dimension_numbers = #tpu.dot_dimension_numbers<[1], [0], [0], [1], [0, 0, 1, 1], [], []>} : vector<32x192xf32>, vector<192x64xf32>, vector<32x64xf32> -> vector<32x64xf32>
    %132 = arith.addf %93, %131 : vector<32x64xf32>
    %cst_45 = arith.constant 0.000000e+00 : f32
    %133 = vector.broadcast %cst_45 : f32 to vector<32x64xf32>
    %134 = arith.maximumf %132, %133 : vector<32x64xf32>
    %135 = tpu.concatenate %34, %36, %53, %73, %75, %92, %112, %114, %131, %134 in 1 : vector<32x64xf32>, vector<32x64xf32>, vector<32x64xf32>, vector<32x64xf32>, vector<32x64xf32>, vector<32x64xf32>, vector<32x64xf32>, vector<32x64xf32>, vector<32x64xf32>, vector<32x64xf32> -> vector<32x640xf32>
    %c0_46 = arith.constant 0 : index
    %c0_47 = arith.constant 0 : index
    %136 = vector.load %arg8[%c0_46, %c0_47] : memref<32x640xf32, #tpu.memory_space<vmem>>, vector<32x640xf32>
    tpu.vector_store %arg8[%c0_46, %c0_47], %135 {strides = array<i32>} : memref<32x640xf32, #tpu.memory_space<vmem>>, vector<32x640xf32>,
    return
  }
  func.func @transform_0(%arg0: i32) -> (i32, i32) {
    %c0_i32 = arith.constant 0 : i32
    %c0_i32_0 = arith.constant 0 : i32
    return %arg0, %c0_i32 : i32, i32
  }
  func.func @transform_1(%arg0: i32) -> (i32, i32) {
    %c0_i32 = arith.constant 0 : i32
    %c0_i32_0 = arith.constant 0 : i32
    %c0_i32_1 = arith.constant 0 : i32
    return %c0_i32, %c0_i32_0 : i32, i32
  }
  func.func @transform_2(%arg0: i32) -> (i32, i32) {
    %c0_i32 = arith.constant 0 : i32
    %c0_i32_0 = arith.constant 0 : i32
    %c0_i32_1 = arith.constant 0 : i32
    return %c0_i32, %c0_i32_0 : i32, i32
  }
  func.func @transform_3(%arg0: i32) -> (i32, i32) {
    %c0_i32 = arith.constant 0 : i32
    %c0_i32_0 = arith.constant 0 : i32
    %c0_i32_1 = arith.constant 0 : i32
    return %c0_i32, %c0_i32_0 : i32, i32
  }
  func.func @transform_4(%arg0: i32) -> (i32, i32) {
    %c0_i32 = arith.constant 0 : i32
    %c0_i32_0 = arith.constant 0 : i32
    %c0_i32_1 = arith.constant 0 : i32
    return %c0_i32, %c0_i32_0 : i32, i32
  }
  func.func @transform_5(%arg0: i32) -> (i32, i32) {
    %c0_i32 = arith.constant 0 : i32
    %c0_i32_0 = arith.constant 0 : i32
    %c0_i32_1 = arith.constant 0 : i32
    return %c0_i32, %c0_i32_0 : i32, i32
  }
  func.func @transform_6(%arg0: i32) -> (i32, i32) {
    %c0_i32 = arith.constant 0 : i32
    %c0_i32_0 = arith.constant 0 : i32
    %c0_i32_1 = arith.constant 0 : i32
    return %c0_i32, %c0_i32_0 : i32, i32
  }
  func.func @transform_7(%arg0: i32) -> (i32, i32) {
    %c0_i32 = arith.constant 0 : i32
    %c0_i32_0 = arith.constant 0 : i32
    return %arg0, %c0_i32 : i32, i32
  }
}

</mosaic_0001>

<bundles_post_ra>
// kernel: _ddrb_core.1
= control target key start
LH: loop header
LB: loop body
LE: loop exit
PB: predicated region body
PF: predicated region fallthrough
CT: control target
= control target key end

     0   :  { %v1534_v2 = vmov 0.0|0.0   ;;  %s1535_s28 = smov 64   ;;  %vm109_vm0 = vcmask 1046528   ;;  %vm143_vm1 = vcmask 523264   ;;  %v30_v44 = vlaneseq  ;;  %s2508_s0 = inlined_call_operand.vmem [shape: f32[32,64], index: 0, kind: input, shape index: {}]   ;;  %s2509_s1 = inlined_call_operand.vmem [shape: f32[192,64], index: 1, kind: input, shape index: {}]   ;;  %s2510_s2 = inlined_call_operand.vmem [shape: f32[192,64], index: 2, kind: input, shape index: {}]   ;;  %s2511_s7 = inlined_call_operand.vmem [shape: f32[32,640], index: 7, kind: output, shape index: {}]   ;;  %s2512_s3 = inlined_call_operand.vmem [shape: f32[192,64], index: 3, kind: input, shape index: {}]   ;;  %s2513_s4 = inlined_call_operand.vmem [shape: f32[192,64], index: 4, kind: input, shape index: {}]   ;;  %s2514_s5 = inlined_call_operand.vmem [shape: f32[192,64], index: 5, kind: input, shape index: {}]   ;;  %s2515_s6 = inlined_call_operand.vmem [shape: f32[192,64], index: 6, kind: input, shape index: {}]  }
   0x1   :  { %v1579_v0 = vld [vmem:[%s2508_s0] sm:$0xff]  ;;  %v1584_v1 = vld [vmem:[%s2508_s0 + $0x10] sm:$0xff]  ;;  %1316 = vmatprep.subr.bf16.mxu0 %v1534_v2  ;;  %1352 = vmatprep.subr.bf16.mxu1 %v1534_v2  ;;  %v1598_v4 = vld [vmem:[%s2508_s0 + $0x8] sm:$0xff]  ;;  %vm89_vm2 = vcmask 1040384   ;;  %vm482_vm7 = vcmask 1045504   ;;  %vm462_vm8 = vcmask 1041408  }
   0x2   :  { %131 = vrot.lane.b32.xlu0 %v1579_v0, %s1535_s28  ;;  %135 = vrot.lane.b32.xlu1 %v1584_v1, %s1535_s28  ;;  %v148_v3 = vld [vmem:[%s2509_s1] sm:$0xff]  ;;  %v1603_v5 = vld [vmem:[%s2508_s0 + $0x18] sm:$0xff]  ;;  %v110_v7 = vrot.slane %v1579_v0, 1  ;;  %v111_v11 = vrot.slane %v1598_v4, 1  ;;  %v31_v45 = vshrl.u32 %v30_v44, 7  ;;  %v90_v47 = vrot.slane %v1579_v0, 7 }
   0x3   :  { %v149_v6 = vld [vmem:[%s2509_s1 + $0x8] sm:$0xff]  ;;  %v150_v9 = vld [vmem:[%s2509_s1 + $0x10] sm:$0xff]  ;;  %v151_v10 = vld [vmem:[%s2509_s1 + $0x18] sm:$0xff]  ;;  %v84_v48 = vrot.slane %v1603_v5, 7  ;;  %v113_v50 = vrot.slane %v1584_v1, 1  ;;  %v93_v54 = vrot.slane %v1584_v1, 7 }
   0x4   :  { %v1317_v8 = vpack.c.bf16 %v149_v6, %v148_v3  ;;  %v112_v12 = vsel %vm109_vm0, %v110_v7, %v111_v11  ;;  %v1320_v13 = vpack.c.bf16 %v151_v10, %v150_v9  ;;  %v152_v14 = vld [vmem:[%s2509_s1 + $0x20] sm:$0xff]  ;;  %v153_v15 = vld [vmem:[%s2509_s1 + $0x28] sm:$0xff]  ;;  %v154_v17 = vld [vmem:[%s2509_s1 + $0x30] sm:$0xff]  ;;  %v32_v46 = vadd.s32 8, %v31_v45 }
   0x5   :  { %1292 = vmatprep.mubr.msk.f32.mxu0 %vm143_vm1, %v112_v12  ;;  %v1323_v16 = vpack.c.bf16 %v153_v15, %v152_v14  ;;  %v155_v18 = vld [vmem:[%s2509_s1 + $0x38] sm:$0xff]  ;;  %v156_v20 = vld [vmem:[%s2509_s1 + $0x40] sm:$0xff]  ;;  %v157_v21 = vld [vmem:[%s2509_s1 + $0x48] sm:$0xff]  ;;  %v1700_v49 = vand.u32 15, %v31_v45  ;;  %v33_v52 = vadd.s32 16, %v31_v45  ;;  %v100_v53 = vsel %vm89_vm2, %v84_v48, %v90_v47 }
   0x6   :  { %133 = vrot.lane.b32.xlu0 %v1598_v4, %s1535_s28  ;;  %137 = vrot.lane.b32.xlu1 %v1603_v5, %s1535_s28  ;;  %v1326_v19 = vpack.c.bf16 %v155_v18, %v154_v17  ;;  %v1329_v22 = vpack.c.bf16 %v157_v21, %v156_v20  ;;  %v158_v23 = vld [vmem:[%s2509_s1 + $0x50] sm:$0xff]  ;;  %v159_v24 = vld [vmem:[%s2509_s1 + $0x58] sm:$0xff]  ;;  %v1703_v51 = vand.u32 15, %v32_v46  ;;  %v114_v55 = vsel %vm109_vm0, %v111_v11, %v113_v50 }
   0x7   :  { %1318 = vmatpush1.bf16.msra.mxu0 %v1317_v8  ;;  %v1332_v25 = vpack.c.bf16 %v159_v24, %v158_v23  ;;  %v160_v26 = vld [vmem:[%s2509_s1 + $0x60] sm:$0xff]  ;;  %v161_v27 = vld [vmem:[%s2509_s1 + $0x68] sm:$0xff]  ;;  %v162_v29 = vld [vmem:[%s2509_s1 + $0x70] sm:$0xff]  ;;  %vm101_vm3 = vcmp.ge.s32.totalorder %v1700_v49, 1  ;;  %v1712_v56 = vand.u32 15, %v33_v52  ;;  %v34_v57 = vadd.s32 24, %v31_v45 }
   0x8   :  { %1319 = vmatprep.subr.bf16.mxu0 %v1534_v2  ;;  %v1335_v28 = vpack.c.bf16 %v161_v27, %v160_v26  ;;  %v163_v30 = vld [vmem:[%s2509_s1 + $0x78] sm:$0xff]  ;;  %v164_v32 = vld [vmem:[%s2509_s1 + $0x80] sm:$0xff]  ;;  %v165_v33 = vld [vmem:[%s2509_s1 + $0x88] sm:$0xff]  ;;  %vm124_vm4 = vcmp.lt.s32.totalorder %v1703_v51, 15  ;;  %v91_v58 = vrot.slane %v1598_v4, 7  ;;  %v105_v59 = vsel %vm101_vm3, %v100_v53, 0.0 }
   0x9   :  { %v1338_v31 = vpack.c.bf16 %v163_v30, %v162_v29  ;;  %v1341_v34 = vpack.c.bf16 %v165_v33, %v164_v32  ;;  %v166_v35 = vld [vmem:[%s2509_s1 + $0x90] sm:$0xff]  ;;  %v167_v36 = vld [vmem:[%s2509_s1 + $0x98] sm:$0xff]  ;;  %v168_v38 = vld [vmem:[%s2509_s1 + $0xa0] sm:$0xff]  ;;  %v115_v60 = vrot.slane %v1603_v5, 1  ;;  %v128_v62 = vsel %vm124_vm4, %v114_v55, 0.0 }
   0xa   :  { %v1344_v37 = vpack.c.bf16 %v167_v36, %v166_v35  ;;  %v169_v39 = vld [vmem:[%s2509_s1 + $0xa8] sm:$0xff]  ;;  %v170_v41 = vld [vmem:[%s2509_s1 + $0xb0] sm:$0xff]  ;;  %v171_v42 = vld [vmem:[%s2509_s1 + $0xb8] sm:$0xff]  ;;  %v94_v3 = vsel %vm89_vm2, %v91_v58, %v93_v54  ;;  %vm103_vm5 = vcmp.ge.s32.totalorder %v1712_v56, 1  ;;  %v1723_v6 = vand.u32 15, %v34_v57 }
   0xb   :  { %1321 = vmatpush1.bf16.msra.mxu0 %v1320_v13  ;;  %v1347_v40 = vpack.c.bf16 %v169_v39, %v168_v38  ;;  %v1350_v43 = vpack.c.bf16 %v171_v42, %v170_v41  ;;  %v92_v8 = vsel %vm89_vm2, %v90_v47, %v91_v58  ;;  %v116_v11 = vsel %vm109_vm0, %v113_v50, %v115_v60  ;;  %v328_v20 = vld [vmem:[%s2510_s2 + $0x8] sm:$0xff]  ;;  %v329_v21 = vld [vmem:[%s2510_s2 + $0x10] sm:$0xff]  ;;  %v330_v23 = vld [vmem:[%s2510_s2 + $0x18] sm:$0xff] }
   0xc   :  { %1322 = vmatprep.subr.bf16.mxu0 %v1534_v2  ;;  %v107_v12 = vsel %vm103_vm5, %v94_v3, 0.0  ;;  %v122_v14 = vsel %vm109_vm0, %v115_v60, %v110_v7  ;;  %vm126_vm6 = vcmp.lt.s32.totalorder %v1723_v6, 15  ;;  %v95_v18 = vsel %vm89_vm2, %v93_v54, %v84_v48  ;;  %v327_v7 = vld [vmem:[%s2510_s2] sm:$0xff]  ;;  %v332_v26 = vld [vmem:[%s2510_s2 + $0x28] sm:$0xff]  ;;  %v334_v29 = vld [vmem:[%s2510_s2 + $0x38] sm:$0xff] }
   0xd   :  { %v130_v17 = vsel %vm126_vm6, %v122_v14, 0.0  ;;  %v1356_v24 = vpack.c.bf16 %v330_v23, %v329_v21  ;;  %v336_v32 = vld [vmem:[%s2510_s2 + $0x48] sm:$0xff]  ;;  %v338_v35 = vld [vmem:[%s2510_s2 + $0x58] sm:$0xff]  ;;  %v345_v46 = vld [vmem:[%s2510_s2 + $0x90] sm:$0xff]  ;;  %vm474_vm9 = vcmp.ge.s32.totalorder %v1700_v49, 2  ;;  %vm497_vm10 = vcmp.lt.s32.totalorder %v1703_v51, 14 }
   0xe   :  { %v340_v38 = vld [vmem:[%s2510_s2 + $0x68] sm:$0xff]  ;;  %v342_v41 = vld [vmem:[%s2510_s2 + $0x78] sm:$0xff]  ;;  %v347_v50 = vld [vmem:[%s2510_s2 + $0xa0] sm:$0xff]  ;;  %vm476_vm11 = vcmp.ge.s32.totalorder %v1712_v56, 2  ;;  %vm499_vm12 = vcmp.lt.s32.totalorder %v1723_v6, 14  ;;  %vm854_vm13 = vcmask 1042432  }
   0xf   :  { %1324 = vmatpush1.bf16.msra.mxu0 %v1323_v16  ;;  %v344_v44 = vld [vmem:[%s2510_s2 + $0x88] sm:$0xff]  ;;  %v346_v47 = vld [vmem:[%s2510_s2 + $0x98] sm:$0xff]  ;;  %v349_v54 = vld [vmem:[%s2510_s2 + $0xb0] sm:$0xff]  ;;  %vm834_vm14 = vcmask 1044480   ;;  %vm846_vm15 = vcmp.ge.s32.totalorder %v1700_v49, 5 }
  0x10   :  { %1325 = vmatprep.subr.bf16.mxu0 %v1534_v2  ;;  %v1380_v48 = vpack.c.bf16 %v346_v47, %v345_v46  ;;  %v348_v52 = vld [vmem:[%s2510_s2 + $0xa8] sm:$0xff]  ;;  %v350_v55 = vld [vmem:[%s2510_s2 + $0xb8] sm:$0xff]  ;;  %v522_v46 = vld [vmem:[%s2512_s3 + $0x10] sm:$0xff] }
  0x11   :  { %v1383_v53 = vpack.c.bf16 %v348_v52, %v347_v50  ;;  %v1386_v57 = vpack.c.bf16 %v350_v55, %v349_v54  ;;  %v524_v52 = vld [vmem:[%s2512_s3 + $0x20] sm:$0xff]  ;;  %v526_v55 = vld [vmem:[%s2512_s3 + $0x30] sm:$0xff] }
  0x13   :  { %1327 = vmatpush1.bf16.msra.mxu0 %v1326_v19 }
  0x14   :  { %1328 = vmatprep.subr.bf16.mxu0 %v1534_v2 }
  0x17   :  { %1330 = vmatpush1.bf16.msra.mxu0 %v1329_v22  ;;  %v1353_v22 = vpack.c.bf16 %v328_v20, %v327_v7 }
  0x18   :  { %1331 = vmatprep.subr.bf16.mxu0 %v1534_v2 }
  0x19   :  { %1354 = vmatpush1.bf16.msra.mxu1 %v1353_v22 }
  0x1a   :  { %1355 = vmatprep.subr.bf16.mxu1 %v1534_v2 }
  0x1b   :  { %1333 = vmatpush1.bf16.msra.mxu0 %v1332_v25  ;;  %v331_v25 = vld [vmem:[%s2510_s2 + $0x20] sm:$0xff] }
  0x1c   :  { %1334 = vmatprep.subr.bf16.mxu0 %v1534_v2  ;;  %v1359_v27 = vpack.c.bf16 %v332_v26, %v331_v25 }
  0x1d   :  { %1357 = vmatpush1.bf16.msra.mxu1 %v1356_v24 }
  0x1e   :  { %1358 = vmatprep.subr.bf16.mxu1 %v1534_v2 }
  0x1f   :  { %1336 = vmatpush1.bf16.msra.mxu0 %v1335_v28  ;;  %v333_v28 = vld [vmem:[%s2510_s2 + $0x30] sm:$0xff] }
  0x20   :  { %1337 = vmatprep.subr.bf16.mxu0 %v1534_v2  ;;  %v1362_v30 = vpack.c.bf16 %v334_v29, %v333_v28 }
  0x21   :  { %1360 = vmatpush1.bf16.msra.mxu1 %v1359_v27 }
  0x22   :  { %1361 = vmatprep.subr.bf16.mxu1 %v1534_v2 }
  0x23   :  { %1339 = vmatpush1.bf16.msra.mxu0 %v1338_v31  ;;  %v335_v31 = vld [vmem:[%s2510_s2 + $0x40] sm:$0xff] }
  0x24   :  { %1340 = vmatprep.subr.bf16.mxu0 %v1534_v2  ;;  %v1365_v33 = vpack.c.bf16 %v336_v32, %v335_v31 }
  0x25   :  { %1363 = vmatpush1.bf16.msra.mxu1 %v1362_v30 }
  0x26   :  { %1364 = vmatprep.subr.bf16.mxu1 %v1534_v2 }
  0x27   :  { %1342 = vmatpush1.bf16.msra.mxu0 %v1341_v34  ;;  %v337_v34 = vld [vmem:[%s2510_s2 + $0x50] sm:$0xff] }
  0x28   :  { %1343 = vmatprep.subr.bf16.mxu0 %v1534_v2  ;;  %v1368_v36 = vpack.c.bf16 %v338_v35, %v337_v34 }
  0x29   :  { %1366 = vmatpush1.bf16.msra.mxu1 %v1365_v33 }
  0x2a   :  { %1367 = vmatprep.subr.bf16.mxu1 %v1534_v2 }
  0x2b   :  { %1345 = vmatpush1.bf16.msra.mxu0 %v1344_v37  ;;  %v339_v37 = vld [vmem:[%s2510_s2 + $0x60] sm:$0xff] }
  0x2c   :  { %1346 = vmatprep.subr.bf16.mxu0 %v1534_v2  ;;  %v1371_v39 = vpack.c.bf16 %v340_v38, %v339_v37 }
  0x2d   :  { %1369 = vmatpush1.bf16.msra.mxu1 %v1368_v36 }
  0x2e   :  { %1370 = vmatprep.subr.bf16.mxu1 %v1534_v2 }
  0x2f   :  { %1348 = vmatpush1.bf16.msra.mxu0 %v1347_v40  ;;  %v341_v40 = vld [vmem:[%s2510_s2 + $0x70] sm:$0xff] }
  0x30   :  { %1349 = vmatprep.subr.bf16.mxu0 %v1534_v2  ;;  %v1374_v42 = vpack.c.bf16 %v342_v41, %v341_v40 }
  0x31   :  { %1372 = vmatpush1.bf16.msra.mxu1 %v1371_v39 }
  0x32   :  { %1373 = vmatprep.subr.bf16.mxu1 %v1534_v2 }
  0x33   :  { %1351 = vmatpush1.bf16.msra.mxu0 %v1350_v43  ;;  %v343_v43 = vld [vmem:[%s2510_s2 + $0x80] sm:$0xff] }
  0x34   :  { %1388 = vmatprep.subr.bf16.mxu0 %v1534_v2  ;;  %v1377_v45 = vpack.c.bf16 %v344_v44, %v343_v43  ;;  %v520_v44 = vld [vmem:[%s2512_s3] sm:$0xff] }
  0x35   :  { %1375 = vmatpush1.bf16.msra.mxu1 %v1374_v42 }
  0x36   :  { %1376 = vmatprep.subr.bf16.mxu1 %v1534_v2 }
  0x39   :  { %1378 = vmatpush1.bf16.msra.mxu1 %v1377_v45  ;;  %v521_v45 = vld [vmem:[%s2512_s3 + $0x8] sm:$0xff] }
  0x3a   :  { %1379 = vmatprep.subr.bf16.mxu1 %v1534_v2  ;;  %v1389_v47 = vpack.c.bf16 %v521_v45, %v520_v44 }
  0x3d   :  { %1381 = vmatpush1.bf16.msra.mxu1 %v1380_v48  ;;  %v523_v48 = vld [vmem:[%s2512_s3 + $0x18] sm:$0xff] }
  0x3e   :  { %1382 = vmatprep.subr.bf16.mxu1 %v1534_v2  ;;  %v1392_v50 = vpack.c.bf16 %v523_v48, %v522_v46 }
  0x41   :  { %1384 = vmatpush1.bf16.msra.mxu1 %v1383_v53  ;;  %v525_v53 = vld [vmem:[%s2512_s3 + $0x28] sm:$0xff] }
  0x42   :  { %1385 = vmatprep.subr.bf16.mxu1 %v1534_v2  ;;  %v1395_v54 = vpack.c.bf16 %v525_v53, %v524_v52 }
  0x45   :  { %1387 = vmatpush1.bf16.msra.mxu1 %v1386_v57  ;;  %v527_v57 = vld [vmem:[%s2512_s3 + $0x38] sm:$0xff] }
  0x46   :  { %1424 = vmatprep.subr.bf16.mxu1 %v1534_v2 }
  0x74   :  { %v132_v61 = vpop.permute.xlu0 %131  ;;  %v136_v9 = vpop.permute.xlu1 %135 }
  0x75   :  { %v144_v63 = vsel %vm143_vm1, %v105_v59, %v132_v61  ;;  %v146_v15 = vsel %vm143_vm1, %v107_v12, %v136_v9 }
  0x76   :  { %249 = vmatmul.mubr.f32.vlgmr.msra.gmra.mrb[0].mxu0 %v144_v63 }
  0x77   :  { %1293 = vmatprep.mubr.msk.f32.mxu0 %vm143_vm1, %v128_v62  ;;  %1390 = vmatpush1.bf16.msra.mxu0 %v1389_v47 }
  0x78   :  { %v134_v10 = vpop.permute.xlu0 %133  ;;  %v138_v16 = vpop.permute.xlu1 %137  ;;  %1391 = vmatprep.subr.bf16.mxu0 %v1534_v2 }
  0x79   :  { %v145_v13 = vsel %vm143_vm1, %v92_v8, %v134_v10  ;;  %v147_v19 = vsel %vm143_vm1, %v95_v18, %v138_v16 }
  0x7a   :  { %254 = vmatmul.mubr.f32.gmra.mrb[2].mxu0 %v145_v13 }
  0x7b   :  { %1294 = vmatprep.mubr.msk.f32.mxu0 %vm143_vm1, %v116_v11  ;;  %1393 = vmatpush1.bf16.msra.mxu0 %v1392_v50 }
  0x7c   :  { %1394 = vmatprep.subr.bf16.mxu0 %v1534_v2 }
  0x7e   :  { %259 = vmatmul.mubr.f32.gmra.mrb[4].mxu0 %v146_v15 }
  0x7f   :  { %1295 = vmatprep.mubr.msk.f32.mxu0 %vm143_vm1, %v130_v17  ;;  %1396 = vmatpush1.bf16.msra.mxu0 %v1395_v54 }
  0x80   :  { %1397 = vmatprep.subr.bf16.mxu0 %v1534_v2 }
  0x82   :  { %264 = vmatmul.mubr.f32.gmra.mrb[6].mxu0 %v147_v19 }
 0x149   :  { %v250_v58 = vpop.f32.mrb[0].mxu0 }
 0x14a   :  { %v269_v59 = vmax.f32 %v250_v58, 0.0  ;;  %v252_v60 = vpop.f32.mrb[1].mxu0 }
 0x14b   :  { %v529_v60 = vld [vmem:[%s2512_s3 + $0x48] sm:$0xff] }
 0x14c   :  { %311 = vrot.lane.b32.xlu0 %v269_v59, %s1535_s28  ;;  %v279_v3 = vrot.slane %v269_v59, 7  ;;  %v294_v9 = vrot.slane %v269_v59, 1  ;;  %v528_v59 = vld [vmem:[%s2512_s3 + $0x40] sm:$0xff] }
 0x14d   :  { %v255_v61 = vpop.f32.mrb[2].mxu0 }
 0x14e   :  { %v270_v62 = vmax.f32 %v255_v61, 0.0  ;;  %v257_v63 = vpop.f32.mrb[3].mxu0 }
 0x14f   :  { %v531_v63 = vld [vmem:[%s2512_s3 + $0x58] sm:$0xff] }
 0x150   :  { %v280_v8 = vrot.slane %v270_v62, 7  ;;  %313 = vrot.lane.b32.xlu1 %v270_v62, %s1535_s28  ;;  %v295_v10 = vrot.slane %v270_v62, 1  ;;  %v530_v62 = vld [vmem:[%s2512_s3 + $0x50] sm:$0xff] }
 0x151   :  { %v260_v11 = vpop.f32.mrb[4].mxu0 }
 0x152   :  { %v271_v12 = vmax.f32 %v260_v11, 0.0  ;;  %v262_v13 = vpop.f32.mrb[5].mxu0  ;;  %v296_v14 = vsel %vm109_vm0, %v294_v9, %v295_v10  ;;  %v281_v15 = vsel %vm89_vm2, %v279_v3, %v280_v8 }
 0x153   :  { %1296 = vmatprep.mubr.msk.f32.mxu1 %vm143_vm1, %v296_v14  ;;  %v536_v14 = vld [vmem:[%s2512_s3 + $0x80] sm:$0xff] }
 0x154   :  { %v282_v16 = vrot.slane %v271_v12, 7  ;;  %v297_v17 = vrot.slane %v271_v12, 1  ;;  %315 = vrot.lane.b32.xlu0 %v271_v12, %s1535_s28  ;;  %v535_v12 = vld [vmem:[%s2512_s3 + $0x78] sm:$0xff] }
 0x155   :  { %v265_v18 = vpop.f32.mrb[6].mxu0 }
 0x156   :  { %v272_v19 = vmax.f32 %v265_v18, 0.0  ;;  %v267_v7 = vpop.f32.mrb[7].mxu0  ;;  %v298_v20 = vsel %vm109_vm0, %v295_v10, %v297_v17  ;;  %v283_v21 = vsel %vm89_vm2, %v280_v8, %v282_v16  ;;  %v532_v8 = vld [vmem:[%s2512_s3 + $0x60] sm:$0xff] }
 0x157   :  { %v308_v32 = vsel %vm124_vm4, %v298_v20, 0.0  ;;  %v292_v37 = vsel %vm103_vm5, %v283_v21, 0.0  ;;  %v540_v7 = vld [vmem:[%s2512_s3 + $0xa0] sm:$0xff]  ;;  %v541_v20 = vld [vmem:[%s2512_s3 + $0xa8] sm:$0xff] }
 0x158   :  { %v274_v22 = vrot.slane %v272_v19, 7  ;;  %v299_v23 = vrot.slane %v272_v19, 1  ;;  %317 = vrot.lane.b32.xlu1 %v272_v19, %s1535_s28  ;;  %v1419_v21 = vpack.c.bf16 %v541_v20, %v540_v7  ;;  %v705_v7 = vld [vmem:[%s2513_s4 + $0x30] sm:$0xff]  ;;  %v706_v20 = vld [vmem:[%s2513_s4 + $0x38] sm:$0xff] }
 0x15a   :  { %v289_v24 = vsel %vm89_vm2, %v274_v22, %v279_v3  ;;  %v300_v25 = vsel %vm109_vm0, %v297_v17, %v299_v23  ;;  %v306_v26 = vsel %vm109_vm0, %v299_v23, %v294_v9  ;;  %v284_v27 = vsel %vm89_vm2, %v282_v16, %v274_v22  ;;  %v533_v9 = vld [vmem:[%s2512_s3 + $0x68] sm:$0xff]  ;;  %v538_v17 = vld [vmem:[%s2512_s3 + $0x90] sm:$0xff]  ;;  %v543_v23 = vld [vmem:[%s2512_s3 + $0xb8] sm:$0xff] }
 0x15b   :  { %v290_v29 = vsel %vm101_vm3, %v289_v24, 0.0  ;;  %v310_v40 = vsel %vm126_vm6, %v306_v26, 0.0  ;;  %v1404_v3 = vpack.c.bf16 %v531_v63, %v530_v62  ;;  %v1407_v10 = vpack.c.bf16 %v533_v9, %v532_v8  ;;  %v542_v22 = vld [vmem:[%s2512_s3 + $0xb0] sm:$0xff] }
 0x15c   :  { %v1422_v24 = vpack.c.bf16 %v543_v23, %v542_v22  ;;  %v707_v22 = vld [vmem:[%s2513_s4 + $0x40] sm:$0xff]  ;;  %v708_v23 = vld [vmem:[%s2513_s4 + $0x48] sm:$0xff]  ;;  %vm869_vm0 = vcmp.lt.s32.totalorder %v1703_v51, 11  ;;  %vm848_vm2 = vcmp.ge.s32.totalorder %v1712_v56, 5  ;;  %vm871_vm3 = vcmp.lt.s32.totalorder %v1723_v6, 11 }
 0x1be   :  { %v312_v28 = vpop.permute.xlu0 %311 }
 0x1bf   :  { %v1248_v30 = vsel %vm143_vm1, %v250_v58, %v312_v28  ;;  %v323_v31 = vsel %vm143_vm1, %v290_v29, %v312_v28  ;;  %v1398_v58 = vpack.c.bf16 %v527_v57, %v526_v55 }
 0x1c0   :  { %1268 = vst [vmem:[%s2511_s7] sm:$0xff] %v1248_v30  ;;  %428 = vmatmul.mubr.f32.vlgmr.msra.gmra.mrb[0].mxu1 %v323_v31 }
 0x1c1   :  { %1297 = vmatprep.mubr.msk.f32.mxu1 %vm143_vm1, %v308_v32  ;;  %1399 = vmatpush1.bf16.msra.mxu0 %v1398_v58 }
 0x1c2   :  { %v314_v33 = vpop.permute.xlu1 %313  ;;  %1400 = vmatprep.subr.bf16.mxu0 %v1534_v2 }
 0x1c3   :  { %v1249_v34 = vsel %vm143_vm1, %v255_v61, %v314_v33  ;;  %v324_v35 = vsel %vm143_vm1, %v281_v15, %v314_v33  ;;  %v1401_v61 = vpack.c.bf16 %v529_v60, %v528_v59  ;;  %v537_v15 = vld [vmem:[%s2512_s3 + $0x88] sm:$0xff] }
 0x1c4   :  { %1273 = vst [vmem:[%s2511_s7 + $0x28] sm:$0xff] %v1249_v34  ;;  %433 = vmatmul.mubr.f32.gmra.mrb[2].mxu1 %v324_v35  ;;  %v1413_v16 = vpack.c.bf16 %v537_v15, %v536_v14  ;;  %v702_v15 = vld [vmem:[%s2513_s4 + $0x18] sm:$0xff] }
 0x1c5   :  { %1298 = vmatprep.mubr.msk.f32.mxu1 %vm143_vm1, %v300_v25  ;;  %1402 = vmatpush1.bf16.msra.mxu0 %v1401_v61 }
 0x1c6   :  { %v316_v36 = vpop.permute.xlu0 %315  ;;  %1403 = vmatprep.subr.bf16.mxu0 %v1534_v2 }
 0x1c7   :  { %v1250_v38 = vsel %vm143_vm1, %v260_v11, %v316_v36  ;;  %v325_v39 = vsel %vm143_vm1, %v292_v37, %v316_v36  ;;  %v534_v11 = vld [vmem:[%s2512_s3 + $0x70] sm:$0xff] }
 0x1c8   :  { %1278 = vst [vmem:[%s2511_s7 + $0x50] sm:$0xff] %v1250_v38  ;;  %438 = vmatmul.mubr.f32.gmra.mrb[4].mxu1 %v325_v39  ;;  %v1410_v13 = vpack.c.bf16 %v535_v12, %v534_v11  ;;  %v699_v11 = vld [vmem:[%s2513_s4] sm:$0xff]  ;;  %v700_v12 = vld [vmem:[%s2513_s4 + $0x8] sm:$0xff] }
 0x1c9   :  { %1299 = vmatprep.mubr.msk.f32.mxu1 %vm143_vm1, %v310_v40  ;;  %1405 = vmatpush1.bf16.msra.mxu0 %v1404_v3  ;;  %v1425_v14 = vpack.c.bf16 %v700_v12, %v699_v11 }
 0x1ca   :  { %v318_v41 = vpop.permute.xlu1 %317  ;;  %1406 = vmatprep.subr.bf16.mxu0 %v1534_v2 }
 0x1cb   :  { %v1251_v42 = vsel %vm143_vm1, %v265_v18, %v318_v41  ;;  %v326_v43 = vsel %vm143_vm1, %v284_v27, %v318_v41  ;;  %v539_v18 = vld [vmem:[%s2512_s3 + $0x98] sm:$0xff]  ;;  %1426 = vmatpush1.bf16.msra.mxu1 %v1425_v14 }
 0x1cc   :  { %1283 = vst [vmem:[%s2511_s7 + $0x78] sm:$0xff] %v1251_v42  ;;  %443 = vmatmul.mubr.f32.gmra.mrb[6].mxu1 %v326_v43  ;;  %v1416_v19 = vpack.c.bf16 %v539_v18, %v538_v17  ;;  %1427 = vmatprep.subr.bf16.mxu1 %v1534_v2  ;;  %v703_v17 = vld [vmem:[%s2513_s4 + $0x20] sm:$0xff]  ;;  %v704_v18 = vld [vmem:[%s2513_s4 + $0x28] sm:$0xff] }
 0x1cd   :  { %1408 = vmatpush1.bf16.msra.mxu0 %v1407_v10 }
 0x1ce   :  { %1409 = vmatprep.subr.bf16.mxu0 %v1534_v2 }
 0x1d1   :  { %1411 = vmatpush1.bf16.msra.mxu0 %v1410_v13  ;;  %v701_v13 = vld [vmem:[%s2513_s4 + $0x10] sm:$0xff] }
 0x1d2   :  { %1412 = vmatprep.subr.bf16.mxu0 %v1534_v2 }
 0x1d5   :  { %1414 = vmatpush1.bf16.msra.mxu0 %v1413_v16  ;;  %v1428_v16 = vpack.c.bf16 %v702_v15, %v701_v13 }
 0x1d6   :  { %1415 = vmatprep.subr.bf16.mxu0 %v1534_v2 }
 0x1d7   :  { %1429 = vmatpush1.bf16.msra.mxu1 %v1428_v16 }
 0x1d8   :  { %1430 = vmatprep.subr.bf16.mxu1 %v1534_v2 }
 0x1d9   :  { %1417 = vmatpush1.bf16.msra.mxu0 %v1416_v19  ;;  %v1431_v19 = vpack.c.bf16 %v704_v18, %v703_v17 }
 0x1da   :  { %1418 = vmatprep.subr.bf16.mxu0 %v1534_v2 }
 0x1db   :  { %1432 = vmatpush1.bf16.msra.mxu1 %v1431_v19 }
 0x1dc   :  { %1433 = vmatprep.subr.bf16.mxu1 %v1534_v2 }
 0x1dd   :  { %1420 = vmatpush1.bf16.msra.mxu0 %v1419_v21  ;;  %v1434_v21 = vpack.c.bf16 %v706_v20, %v705_v7 }
 0x1de   :  { %1421 = vmatprep.subr.bf16.mxu0 %v1534_v2 }
 0x1df   :  { %1435 = vmatpush1.bf16.msra.mxu1 %v1434_v21 }
 0x1e0   :  { %1436 = vmatprep.subr.bf16.mxu1 %v1534_v2 }
 0x1e1   :  { %1423 = vmatpush1.bf16.msra.mxu0 %v1422_v24  ;;  %v1437_v24 = vpack.c.bf16 %v708_v23, %v707_v22 }
 0x1e2   :  { %1460 = vmatprep.subr.bf16.mxu0 %v1534_v2 }
 0x1e3   :  { %1438 = vmatpush1.bf16.msra.mxu1 %v1437_v24 }
 0x1e4   :  { %1439 = vmatprep.subr.bf16.mxu1 %v1534_v2 }
 0x293   :  { %v1954_v25 = vpop.f32.mrb[0].mxu1 }
 0x294   :  { %v1958_v26 = vadd.f32 %v1954_v25, %v1579_v0  ;;  %v431_v27 = vpop.f32.mrb[1].mxu1 }
 0x295   :  { %v709_v27 = vld [vmem:[%s2513_s4 + $0x50] sm:$0xff] }
 0x296   :  { %v452_v28 = vmax.f32 %v1958_v26, 0.0 }
 0x297   :  { %v1961_v29 = vpop.f32.mrb[2].mxu1 }
 0x298   :  { %v1965_v30 = vadd.f32 %v1961_v29, %v1598_v4  ;;  %504 = vrot.lane.b32.xlu0 %v452_v28, %s1535_s28  ;;  %v436_v31 = vpop.f32.mrb[3].mxu1  ;;  %v463_v33 = vrot.slane %v452_v28, 6  ;;  %v483_v4 = vrot.slane %v452_v28, 2  ;;  %v710_v28 = vld [vmem:[%s2513_s4 + $0x58] sm:$0xff] }
 0x299   :  { %v1440_v31 = vpack.c.bf16 %v710_v28, %v709_v27 }
 0x29a   :  { %v453_v32 = vmax.f32 %v1965_v30, 0.0 }
 0x29b   :  { %v1969_v34 = vpop.f32.mrb[4].mxu1  ;;  %1441 = vmatpush1.bf16.msra.mxu1 %v1440_v31 }
 0x29c   :  { %v464_v0 = vrot.slane %v453_v32, 6  ;;  %v1973_v35 = vadd.f32 %v1969_v34, %v1584_v1  ;;  %506 = vrot.lane.b32.xlu1 %v453_v32, %s1535_s28  ;;  %v441_v36 = vpop.f32.mrb[5].mxu1  ;;  %v484_v37 = vrot.slane %v453_v32, 2  ;;  %v711_v32 = vld [vmem:[%s2513_s4 + $0x60] sm:$0xff]  ;;  %1442 = vmatprep.subr.bf16.mxu1 %v1534_v2 }
 0x29d   :  { %v713_v36 = vld [vmem:[%s2513_s4 + $0x70] sm:$0xff] }
 0x29e   :  { %v454_v38 = vmax.f32 %v1973_v35, 0.0  ;;  %v485_v39 = vsel %vm482_vm7, %v483_v4, %v484_v37  ;;  %v465_v40 = vsel %vm462_vm8, %v463_v33, %v464_v0 }
 0x29f   :  { %v1979_v41 = vpop.f32.mrb[6].mxu1  ;;  %1300 = vmatprep.mubr.msk.f32.mxu0 %vm143_vm1, %v485_v39  ;;  %v716_v39 = vld [vmem:[%s2513_s4 + $0x88] sm:$0xff] }
 0x2a0   :  { %v466_v42 = vrot.slane %v454_v38, 6  ;;  %v486_v43 = vrot.slane %v454_v38, 2  ;;  %v1984_v1 = vadd.f32 %v1979_v41, %v1603_v5  ;;  %508 = vrot.lane.b32.xlu0 %v454_v38, %s1535_s28  ;;  %v446_v44 = vpop.f32.mrb[7].mxu1  ;;  %v715_v38 = vld [vmem:[%s2513_s4 + $0x80] sm:$0xff] }
 0x2a2   :  { %v455_v45 = vmax.f32 %v1984_v1, 0.0  ;;  %v487_v46 = vsel %vm482_vm7, %v484_v37, %v486_v43  ;;  %v467_v47 = vsel %vm462_vm8, %v464_v0, %v466_v42 }
 0x2a3   :  { %v501_v59 = vsel %vm497_vm10, %v487_v46, 0.0  ;;  %v480_v63 = vsel %vm476_vm11, %v467_v47, 0.0  ;;  %v720_v46 = vld [vmem:[%s2513_s4 + $0xa8] sm:$0xff] }
 0x2a4   :  { %v457_v48 = vrot.slane %v455_v45, 6  ;;  %510 = vrot.lane.b32.xlu1 %v455_v45, %s1535_s28  ;;  %v488_v50 = vrot.slane %v455_v45, 2  ;;  %v719_v45 = vld [vmem:[%s2513_s4 + $0xa0] sm:$0xff] }
 0x2a5   :  { %v1455_v47 = vpack.c.bf16 %v720_v46, %v719_v45  ;;  %v896_v46 = vld [vmem:[%s2514_s5 + $0x20] sm:$0xff] }
 0x2a6   :  { %v473_v52 = vsel %vm462_vm8, %v457_v48, %v463_v33  ;;  %v489_v53 = vsel %vm482_vm7, %v486_v43, %v488_v50  ;;  %v495_v5 = vsel %vm482_vm7, %v488_v50, %v483_v4  ;;  %v468_v54 = vsel %vm462_vm8, %v466_v42, %v457_v48  ;;  %v712_v33 = vld [vmem:[%s2513_s4 + $0x68] sm:$0xff]  ;;  %v714_v4 = vld [vmem:[%s2513_s4 + $0x78] sm:$0xff]  ;;  %v717_v42 = vld [vmem:[%s2513_s4 + $0x90] sm:$0xff] }
 0x2a7   :  { %v478_v57 = vsel %vm474_vm9, %v473_v52, 0.0  ;;  %v503_v8 = vsel %vm499_vm12, %v495_v5, 0.0  ;;  %v1443_v0 = vpack.c.bf16 %v712_v33, %v711_v32  ;;  %v1446_v37 = vpack.c.bf16 %v714_v4, %v713_v36  ;;  %v718_v43 = vld [vmem:[%s2513_s4 + $0x98] sm:$0xff]  ;;  %v721_v48 = vld [vmem:[%s2513_s4 + $0xb0] sm:$0xff] }
 0x2a8   :  { %v1452_v44 = vpack.c.bf16 %v718_v43, %v717_v42  ;;  %v722_v50 = vld [vmem:[%s2513_s4 + $0xb8] sm:$0xff]  ;;  %v894_v42 = vld [vmem:[%s2514_s5 + $0x10] sm:$0xff] }
 0x2a9   :  { %1444 = vmatpush1.bf16.msra.mxu1 %v1443_v0  ;;  %v1458_v52 = vpack.c.bf16 %v722_v50, %v721_v48  ;;  %v898_v50 = vld [vmem:[%s2514_s5 + $0x30] sm:$0xff] }
 0x2aa   :  { %1445 = vmatprep.subr.bf16.mxu1 %v1534_v2 }
 0x2ad   :  { %1447 = vmatpush1.bf16.msra.mxu1 %v1446_v37 }
 0x2ae   :  { %1448 = vmatprep.subr.bf16.mxu1 %v1534_v2 }
 0x30a   :  { %v505_v55 = vpop.permute.xlu0 %504 }
 0x30b   :  { %v516_v58 = vsel %vm143_vm1, %v478_v57, %v505_v55 }
 0x30c   :  { %621 = vmatmul.mubr.f32.vlgmr.msra.gmra.mrb[8].mxu0 %v516_v58 }
 0x30d   :  { %1301 = vmatprep.mubr.msk.f32.mxu0 %vm143_vm1, %v501_v59 }
 0x30e   :  { %v507_v60 = vpop.permute.xlu1 %506 }
 0x30f   :  { %v517_v61 = vsel %vm143_vm1, %v465_v40, %v507_v60  ;;  %v1449_v40 = vpack.c.bf16 %v716_v39, %v715_v38  ;;  %v892_v39 = vld [vmem:[%s2514_s5] sm:$0xff] }
 0x310   :  { %626 = vmatmul.mubr.f32.gmra.mrb[10].mxu0 %v517_v61 }
 0x311   :  { %1302 = vmatprep.mubr.msk.f32.mxu0 %vm143_vm1, %v489_v53  ;;  %1450 = vmatpush1.bf16.msra.mxu1 %v1449_v40  ;;  %v893_v40 = vld [vmem:[%s2514_s5 + $0x8] sm:$0xff] }
 0x312   :  { %v509_v62 = vpop.permute.xlu0 %508  ;;  %1451 = vmatprep.subr.bf16.mxu1 %v1534_v2  ;;  %v1461_v43 = vpack.c.bf16 %v893_v40, %v892_v39 }
 0x313   :  { %v518_v3 = vsel %vm143_vm1, %v480_v63, %v509_v62 }
 0x314   :  { %631 = vmatmul.mubr.f32.gmra.mrb[12].mxu0 %v518_v3 }
 0x315   :  { %1303 = vmatprep.mubr.msk.f32.mxu0 %vm143_vm1, %v503_v8  ;;  %1453 = vmatpush1.bf16.msra.mxu1 %v1452_v44  ;;  %v895_v44 = vld [vmem:[%s2514_s5 + $0x18] sm:$0xff] }
 0x316   :  { %v511_v9 = vpop.permute.xlu1 %510  ;;  %1454 = vmatprep.subr.bf16.mxu1 %v1534_v2  ;;  %1462 = vmatpush1.bf16.msra.mxu0 %v1461_v43  ;;  %v1464_v45 = vpack.c.bf16 %v895_v44, %v894_v42 }
 0x317   :  { %v519_v10 = vsel %vm143_vm1, %v468_v54, %v511_v9  ;;  %1463 = vmatprep.subr.bf16.mxu0 %v1534_v2 }
 0x318   :  { %636 = vmatmul.mubr.f32.gmra.mrb[14].mxu0 %v519_v10 }
 0x319   :  { %1456 = vmatpush1.bf16.msra.mxu1 %v1455_v47  ;;  %v897_v47 = vld [vmem:[%s2514_s5 + $0x28] sm:$0xff] }
 0x31a   :  { %1457 = vmatprep.subr.bf16.mxu1 %v1534_v2  ;;  %1465 = vmatpush1.bf16.msra.mxu0 %v1464_v45  ;;  %v1467_v48 = vpack.c.bf16 %v897_v47, %v896_v46 }
 0x31b   :  { %1466 = vmatprep.subr.bf16.mxu0 %v1534_v2 }
 0x31d   :  { %1459 = vmatpush1.bf16.msra.mxu1 %v1458_v52  ;;  %v899_v52 = vld [vmem:[%s2514_s5 + $0x38] sm:$0xff] }
 0x31e   :  { %1496 = vmatprep.subr.bf16.mxu1 %v1534_v2  ;;  %1468 = vmatpush1.bf16.msra.mxu0 %v1467_v48 }
 0x31f   :  { %1469 = vmatprep.subr.bf16.mxu0 %v1534_v2 }
 0x3df   :  { %v2098_v53 = vpop.f32.mrb[8].mxu0 }
 0x3e0   :  { %v2101_v5 = vmax.f32 %v2098_v53, 0.0  ;;  %v624_v54 = vpop.f32.mrb[9].mxu0 }
 0x3e1   :  { %v1470_v54 = vpack.c.bf16 %v899_v52, %v898_v50 }
 0x3e2   :  { %683 = vrot.lane.b32.xlu0 %v2101_v5, %s1535_s28  ;;  %v666_v59 = vrot.slane %v2101_v5, 2  ;;  %v651_v12 = vrot.slane %v2101_v5, 6 }
 0x3e3   :  { %v2105_v55 = vpop.f32.mrb[10].mxu0  ;;  %1471 = vmatpush1.bf16.msra.mxu0 %v1470_v54 }
 0x3e4   :  { %v2108_v57 = vmax.f32 %v2105_v55, 0.0  ;;  %v629_v58 = vpop.f32.mrb[11].mxu0  ;;  %1472 = vmatprep.subr.bf16.mxu0 %v1534_v2 }
 0x3e5   :  { %v900_v58 = vld [vmem:[%s2514_s5 + $0x40] sm:$0xff] }
 0x3e6   :  { %685 = vrot.lane.b32.xlu1 %v2108_v57, %s1535_s28  ;;  %v667_v60 = vrot.slane %v2108_v57, 2  ;;  %v652_v18 = vrot.slane %v2108_v57, 6 }
 0x3e7   :  { %v2114_v61 = vpop.f32.mrb[12].mxu0 }
 0x3e8   :  { %v2117_v62 = vmax.f32 %v2114_v61, 0.0  ;;  %v634_v63 = vpop.f32.mrb[13].mxu0  ;;  %v668_v3 = vsel %vm482_vm7, %v666_v59, %v667_v60  ;;  %v653_v23 = vsel %vm462_vm8, %v651_v12, %v652_v18 }
 0x3e9   :  { %1304 = vmatprep.mubr.msk.f32.mxu1 %vm143_vm1, %v668_v3  ;;  %v902_v63 = vld [vmem:[%s2514_s5 + $0x50] sm:$0xff]  ;;  %v903_v3 = vld [vmem:[%s2514_s5 + $0x58] sm:$0xff] }
 0x3ea   :  { %687 = vrot.lane.b32.xlu0 %v2117_v62, %s1535_s28  ;;  %v669_v13 = vrot.slane %v2117_v62, 2  ;;  %v654_v7 = vrot.slane %v2117_v62, 6 }
 0x3eb   :  { %v2123_v8 = vpop.f32.mrb[14].mxu0 }
 0x3ec   :  { %v2126_v9 = vmax.f32 %v2123_v8, 0.0  ;;  %v639_v10 = vpop.f32.mrb[15].mxu0  ;;  %v670_v15 = vsel %vm482_vm7, %v667_v60, %v669_v13  ;;  %v655_v27 = vsel %vm462_vm8, %v652_v18, %v654_v7  ;;  %v909_v18 = vld [vmem:[%s2514_s5 + $0x88] sm:$0xff] }
 0x3ed   :  { %v680_v20 = vsel %vm497_vm10, %v670_v15, 0.0  ;;  %v664_v33 = vsel %vm476_vm11, %v655_v27, 0.0  ;;  %v1476_v10 = vpack.c.bf16 %v903_v3, %v902_v63  ;;  %v907_v15 = vld [vmem:[%s2514_s5 + $0x78] sm:$0xff]  ;;  %v914_v27 = vld [vmem:[%s2514_s5 + $0xb0] sm:$0xff] }
 0x3ee   :  { %689 = vrot.lane.b32.xlu1 %v2126_v9, %s1535_s28  ;;  %v646_v11 = vrot.slane %v2126_v9, 6  ;;  %v671_v21 = vrot.slane %v2126_v9, 2 }
 0x3f0   :  { %v661_v14 = vsel %vm462_vm8, %v646_v11, %v651_v12  ;;  %v672_v28 = vsel %vm482_vm7, %v669_v13, %v671_v21  ;;  %v678_v31 = vsel %vm482_vm7, %v671_v21, %v666_v59  ;;  %v656_v37 = vsel %vm462_vm8, %v654_v7, %v646_v11  ;;  %v901_v59 = vld [vmem:[%s2514_s5 + $0x48] sm:$0xff]  ;;  %v904_v11 = vld [vmem:[%s2514_s5 + $0x60] sm:$0xff]  ;;  %v910_v7 = vld [vmem:[%s2514_s5 + $0x90] sm:$0xff] }
 0x3f1   :  { %v662_v17 = vsel %vm474_vm9, %v661_v14, 0.0  ;;  %v682_v36 = vsel %vm499_vm12, %v678_v31, 0.0  ;;  %v1473_v60 = vpack.c.bf16 %v901_v59, %v900_v58  ;;  %v905_v12 = vld [vmem:[%s2514_s5 + $0x68] sm:$0xff]  ;;  %v906_v14 = vld [vmem:[%s2514_s5 + $0x70] sm:$0xff] }
 0x3f2   :  { %v1479_v13 = vpack.c.bf16 %v905_v12, %v904_v11 }
 0x3f3   :  { %1474 = vmatpush1.bf16.msra.mxu0 %v1473_v60 }
 0x3f4   :  { %1475 = vmatprep.subr.bf16.mxu0 %v1534_v2 }
 0x3f7   :  { %1477 = vmatpush1.bf16.msra.mxu0 %v1476_v10 }
 0x3f8   :  { %1478 = vmatprep.subr.bf16.mxu0 %v1534_v2 }
 0x3fb   :  { %1480 = vmatpush1.bf16.msra.mxu0 %v1479_v13 }
 0x3fc   :  { %1481 = vmatprep.subr.bf16.mxu0 %v1534_v2 }
 0x454   :  { %v684_v16 = vpop.permute.xlu0 %683 }
 0x455   :  { %v695_v19 = vsel %vm143_vm1, %v662_v17, %v684_v16  ;;  %v1482_v16 = vpack.c.bf16 %v907_v15, %v906_v14  ;;  %v908_v17 = vld [vmem:[%s2514_s5 + $0x80] sm:$0xff] }
 0x456   :  { %800 = vmatmul.mubr.f32.vlgmr.msra.gmra.mrb[8].mxu1 %v695_v19  ;;  %v1485_v19 = vpack.c.bf16 %v909_v18, %v908_v17 }
 0x457   :  { %1305 = vmatprep.mubr.msk.f32.mxu1 %vm143_vm1, %v680_v20  ;;  %1483 = vmatpush1.bf16.msra.mxu0 %v1482_v16  ;;  %v911_v20 = vld [vmem:[%s2514_s5 + $0x98] sm:$0xff] }
 0x458   :  { %v686_v22 = vpop.permute.xlu1 %685  ;;  %1484 = vmatprep.subr.bf16.mxu0 %v1534_v2  ;;  %v1488_v21 = vpack.c.bf16 %v911_v20, %v910_v7 }
 0x459   :  { %v696_v24 = vsel %vm143_vm1, %v653_v23, %v686_v22  ;;  %v912_v22 = vld [vmem:[%s2514_s5 + $0xa0] sm:$0xff]  ;;  %v913_v23 = vld [vmem:[%s2514_s5 + $0xa8] sm:$0xff] }
 0x45a   :  { %805 = vmatmul.mubr.f32.gmra.mrb[10].mxu1 %v696_v24  ;;  %v1491_v24 = vpack.c.bf16 %v913_v23, %v912_v22 }
 0x45b   :  { %1306 = vmatprep.mubr.msk.f32.mxu1 %vm143_vm1, %v672_v28  ;;  %1486 = vmatpush1.bf16.msra.mxu0 %v1485_v19  ;;  %v915_v28 = vld [vmem:[%s2514_s5 + $0xb8] sm:$0xff] }
 0x45c   :  { %v688_v32 = vpop.permute.xlu0 %687  ;;  %1487 = vmatprep.subr.bf16.mxu0 %v1534_v2  ;;  %v1494_v31 = vpack.c.bf16 %v915_v28, %v914_v27  ;;  %v1071_v27 = vld [vmem:[%s2515_s6] sm:$0xff]  ;;  %v1072_v28 = vld [vmem:[%s2515_s6 + $0x8] sm:$0xff] }
 0x45d   :  { %v697_v0 = vsel %vm143_vm1, %v664_v33, %v688_v32 }
 0x45e   :  { %810 = vmatmul.mubr.f32.gmra.mrb[12].mxu1 %v697_v0 }
 0x45f   :  { %1307 = vmatprep.mubr.msk.f32.mxu1 %vm143_vm1, %v682_v36  ;;  %1489 = vmatpush1.bf16.msra.mxu0 %v1488_v21 }
 0x460   :  { %v690_v4 = vpop.permute.xlu1 %689  ;;  %1490 = vmatprep.subr.bf16.mxu0 %v1534_v2 }
 0x461   :  { %v698_v38 = vsel %vm143_vm1, %v656_v37, %v690_v4 }
 0x462   :  { %815 = vmatmul.mubr.f32.gmra.mrb[14].mxu1 %v698_v38 }
 0x463   :  { %1492 = vmatpush1.bf16.msra.mxu0 %v1491_v24 }
 0x464   :  { %1493 = vmatprep.subr.bf16.mxu0 %v1534_v2 }
 0x467   :  { %1495 = vmatpush1.bf16.msra.mxu0 %v1494_v31  ;;  %v1073_v31 = vld [vmem:[%s2515_s6 + $0x10] sm:$0xff] }
 0x529   :  { %v2241_v32 = vpop.f32.mrb[8].mxu1 }
 0x52a   :  { %v2245_v33 = vadd.f32 %v2241_v32, %v1958_v26  ;;  %v803_v0 = vpop.f32.mrb[9].mxu1 }
 0x52b   :  { %v1497_v0 = vpack.c.bf16 %v1072_v28, %v1071_v27 }
 0x52c   :  { %v824_v36 = vmax.f32 %v2245_v33, 0.0 }
 0x52d   :  { %v2248_v4 = vpop.f32.mrb[10].mxu1  ;;  %1498 = vmatpush1.bf16.msra.mxu1 %v1497_v0 }
 0x52e   :  { %v2252_v37 = vadd.f32 %v2248_v4, %v1965_v30  ;;  %876 = vrot.lane.b32.xlu0 %v824_v36, %s1535_s28  ;;  %v808_v38 = vpop.f32.mrb[11].mxu1  ;;  %v835_v40 = vrot.slane %v824_v36, 3  ;;  %v855_v30 = vrot.slane %v824_v36, 5  ;;  %v1074_v36 = vld [vmem:[%s2515_s6 + $0x18] sm:$0xff]  ;;  %1499 = vmatprep.subr.bf16.mxu1 %v1534_v2 }
 0x52f   :  { %v1500_v38 = vpack.c.bf16 %v1074_v36, %v1073_v31 }
 0x530   :  { %v825_v39 = vmax.f32 %v2252_v37, 0.0 }
 0x531   :  { %v2256_v42 = vpop.f32.mrb[12].mxu1  ;;  %1501 = vmatpush1.bf16.msra.mxu1 %v1500_v38 }
 0x532   :  { %v836_v26 = vrot.slane %v825_v39, 3  ;;  %v2260_v43 = vadd.f32 %v2256_v42, %v1973_v35  ;;  %878 = vrot.lane.b32.xlu1 %v825_v39, %s1535_s28  ;;  %v813_v44 = vpop.f32.mrb[13].mxu1  ;;  %v856_v45 = vrot.slane %v825_v39, 5  ;;  %v1075_v39 = vld [vmem:[%s2515_s6 + $0x20] sm:$0xff]  ;;  %1502 = vmatprep.subr.bf16.mxu1 %v1534_v2 }
 0x533   :  { %v1077_v44 = vld [vmem:[%s2515_s6 + $0x30] sm:$0xff] }
 0x534   :  { %v826_v46 = vmax.f32 %v2260_v43, 0.0  ;;  %v857_v47 = vsel %vm854_vm13, %v855_v30, %v856_v45  ;;  %v837_v48 = vsel %vm834_vm14, %v835_v40, %v836_v26 }
 0x535   :  { %v2266_v50 = vpop.f32.mrb[14].mxu1  ;;  %1308 = vmatprep.mubr.msk.f32.mxu0 %vm143_vm1, %v857_v47  ;;  %v1080_v47 = vld [vmem:[%s2515_s6 + $0x48] sm:$0xff] }
 0x536   :  { %v838_v52 = vrot.slane %v826_v46, 3  ;;  %v858_v54 = vrot.slane %v826_v46, 5  ;;  %v2271_v35 = vadd.f32 %v2266_v50, %v1984_v1  ;;  %880 = vrot.lane.b32.xlu0 %v826_v46, %s1535_s28  ;;  %v818_v58 = vpop.f32.mrb[15].mxu1  ;;  %v1079_v46 = vld [vmem:[%s2515_s6 + $0x40] sm:$0xff] }
 0x538   :  { %v827_v59 = vmax.f32 %v2271_v35, 0.0  ;;  %v859_v60 = vsel %vm854_vm13, %v856_v45, %v858_v54  ;;  %v839_v63 = vsel %vm834_vm14, %v836_v26, %v838_v52 }
 0x539   :  { %v873_v17 = vsel %vm869_vm0, %v859_v60, 0.0  ;;  %v852_v20 = vsel %vm848_vm2, %v839_v63, 0.0  ;;  %v1084_v60 = vld [vmem:[%s2515_s6 + $0x68] sm:$0xff] }
 0x53a   :  { %v829_v3 = vrot.slane %v827_v59, 3  ;;  %882 = vrot.lane.b32.xlu1 %v827_v59, %s1535_s28  ;;  %v860_v10 = vrot.slane %v827_v59, 5  ;;  %v1083_v59 = vld [vmem:[%s2515_s6 + $0x60] sm:$0xff] }
 0x53b   :  { %v1515_v63 = vpack.c.bf16 %v1084_v60, %v1083_v59 }
 0x53c   :  { %v845_v11 = vsel %vm834_vm14, %v829_v3, %v835_v40  ;;  %v861_v12 = vsel %vm854_vm13, %v858_v54, %v860_v10  ;;  %v867_v1 = vsel %vm854_vm13, %v860_v10, %v855_v30  ;;  %v840_v13 = vsel %vm834_vm14, %v838_v52, %v829_v3  ;;  %v1076_v40 = vld [vmem:[%s2515_s6 + $0x28] sm:$0xff]  ;;  %v1078_v30 = vld [vmem:[%s2515_s6 + $0x38] sm:$0xff]  ;;  %v1081_v52 = vld [vmem:[%s2515_s6 + $0x50] sm:$0xff] }
 0x53d   :  { %v850_v15 = vsel %vm846_vm15, %v845_v11, 0.0  ;;  %v875_v22 = vsel %vm871_vm3, %v867_v1, 0.0  ;;  %v1503_v26 = vpack.c.bf16 %v1076_v40, %v1075_v39  ;;  %v1506_v45 = vpack.c.bf16 %v1078_v30, %v1077_v44  ;;  %v1082_v54 = vld [vmem:[%s2515_s6 + $0x58] sm:$0xff]  ;;  %v1085_v3 = vld [vmem:[%s2515_s6 + $0x70] sm:$0xff]  ;;  %v1088_v1 = vld [vmem:[%s2515_s6 + $0x88] sm:$0xff] }
 0x53e   :  { %v1512_v58 = vpack.c.bf16 %v1082_v54, %v1081_v52  ;;  %v1086_v10 = vld [vmem:[%s2515_s6 + $0x78] sm:$0xff] }
 0x53f   :  { %1504 = vmatpush1.bf16.msra.mxu1 %v1503_v26  ;;  %v1518_v11 = vpack.c.bf16 %v1086_v10, %v1085_v3 }
 0x540   :  { %1505 = vmatprep.subr.bf16.mxu1 %v1534_v2 }
 0x543   :  { %1507 = vmatpush1.bf16.msra.mxu1 %v1506_v45 }
 0x544   :  { %1508 = vmatprep.subr.bf16.mxu1 %v1534_v2 }
 0x5a0   :  { %v877_v14 = vpop.permute.xlu0 %876 }
 0x5a1   :  { %v888_v16 = vsel %vm143_vm1, %v850_v15, %v877_v14  ;;  %v1089_v14 = vld [vmem:[%s2515_s6 + $0x90] sm:$0xff]  ;;  %v1090_v15 = vld [vmem:[%s2515_s6 + $0x98] sm:$0xff] }
 0x5a2   :  { %993 = vmatmul.mubr.f32.vlgmr.msra.gmra.mrb[16].mxu0 %v888_v16  ;;  %v1524_v16 = vpack.c.bf16 %v1090_v15, %v1089_v14 }
 0x5a3   :  { %1309 = vmatprep.mubr.msk.f32.mxu0 %vm143_vm1, %v873_v17  ;;  %v1091_v17 = vld [vmem:[%s2515_s6 + $0xa0] sm:$0xff] }
 0x5a4   :  { %v879_v18 = vpop.permute.xlu1 %878 }
 0x5a5   :  { %v889_v19 = vsel %vm143_vm1, %v837_v48, %v879_v18  ;;  %v1509_v48 = vpack.c.bf16 %v1080_v47, %v1079_v46  ;;  %v1092_v18 = vld [vmem:[%s2515_s6 + $0xa8] sm:$0xff] }
 0x5a6   :  { %998 = vmatmul.mubr.f32.gmra.mrb[18].mxu0 %v889_v19  ;;  %v1527_v19 = vpack.c.bf16 %v1092_v18, %v1091_v17 }
 0x5a7   :  { %1310 = vmatprep.mubr.msk.f32.mxu0 %vm143_vm1, %v861_v12  ;;  %1510 = vmatpush1.bf16.msra.mxu1 %v1509_v48  ;;  %v1087_v12 = vld [vmem:[%s2515_s6 + $0x80] sm:$0xff] }
 0x5a8   :  { %v881_v7 = vpop.permute.xlu0 %880  ;;  %1511 = vmatprep.subr.bf16.mxu1 %v1534_v2 }
 0x5a9   :  { %v890_v21 = vsel %vm143_vm1, %v852_v20, %v881_v7  ;;  %v1093_v7 = vld [vmem:[%s2515_s6 + $0xb0] sm:$0xff]  ;;  %v1094_v20 = vld [vmem:[%s2515_s6 + $0xb8] sm:$0xff] }
 0x5aa   :  { %1003 = vmatmul.mubr.f32.gmra.mrb[20].mxu0 %v890_v21  ;;  %v1530_v21 = vpack.c.bf16 %v1094_v20, %v1093_v7 }
 0x5ab   :  { %1311 = vmatprep.mubr.msk.f32.mxu0 %vm143_vm1, %v875_v22  ;;  %1513 = vmatpush1.bf16.msra.mxu1 %v1512_v58 }
 0x5ac   :  { %v883_v23 = vpop.permute.xlu1 %882  ;;  %1514 = vmatprep.subr.bf16.mxu1 %v1534_v2 }
 0x5ad   :  { %v891_v24 = vsel %vm143_vm1, %v840_v13, %v883_v23  ;;  %v1521_v13 = vpack.c.bf16 %v1088_v1, %v1087_v12 }
 0x5ae   :  { %1008 = vmatmul.mubr.f32.gmra.mrb[22].mxu0 %v891_v24 }
 0x5af   :  { %1516 = vmatpush1.bf16.msra.mxu1 %v1515_v63 }
 0x5b0   :  { %1517 = vmatprep.subr.bf16.mxu1 %v1534_v2 }
 0x5b3   :  { %1519 = vmatpush1.bf16.msra.mxu1 %v1518_v11 }
 0x5b4   :  { %1520 = vmatprep.subr.bf16.mxu1 %v1534_v2 }
 0x5b7   :  { %1522 = vmatpush1.bf16.msra.mxu1 %v1521_v13 }
 0x5b8   :  { %1523 = vmatprep.subr.bf16.mxu1 %v1534_v2 }
 0x5bb   :  { %1525 = vmatpush1.bf16.msra.mxu1 %v1524_v16 }
 0x5bc   :  { %1526 = vmatprep.subr.bf16.mxu1 %v1534_v2 }
 0x5bf   :  { %1528 = vmatpush1.bf16.msra.mxu1 %v1527_v19 }
 0x5c0   :  { %1529 = vmatprep.subr.bf16.mxu1 %v1534_v2 }
 0x5c3   :  { %1531 = vmatpush1.bf16.msra.mxu1 %v1530_v21 }
 0x675   :  { %v994_v22 = vpop.f32.mrb[16].mxu0 }
 0x676   :  { %v1013_v23 = vmax.f32 %v994_v22, 0.0  ;;  %v996_v24 = vpop.f32.mrb[17].mxu0 }
 0x678   :  { %1055 = vrot.lane.b32.xlu0 %v1013_v23, %s1535_s28  ;;  %v1023_v0 = vrot.slane %v1013_v23, 3  ;;  %v1038_v36 = vrot.slane %v1013_v23, 5 }
 0x679   :  { %v999_v27 = vpop.f32.mrb[18].mxu0 }
 0x67a   :  { %v1014_v28 = vmax.f32 %v999_v27, 0.0  ;;  %v1001_v31 = vpop.f32.mrb[19].mxu0 }
 0x67c   :  { %v1024_v38 = vrot.slane %v1014_v28, 3  ;;  %v1039_v39 = vrot.slane %v1014_v28, 5  ;;  %1057 = vrot.lane.b32.xlu1 %v1014_v28, %s1535_s28 }
 0x67d   :  { %v1004_v40 = vpop.f32.mrb[20].mxu0 }
 0x67e   :  { %v1015_v26 = vmax.f32 %v1004_v40, 0.0  ;;  %v1006_v44 = vpop.f32.mrb[21].mxu0  ;;  %v1040_v2 = vsel %vm854_vm13, %v1038_v36, %v1039_v39  ;;  %v1025_v30 = vsel %vm834_vm14, %v1023_v0, %v1024_v38 }
 0x67f   :  { %1312 = vmatprep.mubr.msk.f32.mxu1 %vm143_vm1, %v1040_v2 }
 0x680   :  { %v1026_v45 = vrot.slane %v1015_v26, 3  ;;  %v1041_v46 = vrot.slane %v1015_v26, 5  ;;  %1059 = vrot.lane.b32.xlu0 %v1015_v26, %s1535_s28 }
 0x681   :  { %v1009_v47 = vpop.f32.mrb[22].mxu0 }
 0x682   :  { %v1016_v48 = vmax.f32 %v1009_v47, 0.0  ;;  %v1011_v52 = vpop.f32.mrb[23].mxu0  ;;  %v1042_v54 = vsel %vm854_vm13, %v1039_v39, %v1041_v46  ;;  %v1027_v58 = vsel %vm834_vm14, %v1024_v38, %v1026_v45 }
 0x683   :  { %v1036_v12 = vsel %vm848_vm2, %v1027_v58, 0.0 }
 0x684   :  { %v1018_v59 = vrot.slane %v1016_v48, 3  ;;  %v1043_v60 = vrot.slane %v1016_v48, 5  ;;  %1204 = vrot.lane.b32.xlu0 %v2098_v53, %s1535_s28  ;;  %1061 = vrot.lane.b32.xlu1 %v1016_v48, %s1535_s28 }
 0x686   :  { %v1033_v63 = vsel %vm834_vm14, %v1018_v59, %v1023_v0  ;;  %v1044_v3 = vsel %vm854_vm13, %v1041_v46, %v1043_v60  ;;  %v1050_v10 = vsel %vm854_vm13, %v1043_v60, %v1038_v36  ;;  %v1028_v11 = vsel %vm834_vm14, %v1026_v45, %v1018_v59 }
 0x687   :  { %v1054_v13 = vsel %vm871_vm3, %v1050_v10, 0.0 }
 0x688   :  { %1208 = vrot.lane.b32.xlu0 %v2114_v61, %s1535_s28  ;;  %1206 = vrot.lane.b32.xlu1 %v2105_v55, %s1535_s28  ;;  %v1034_v61 = vsel %vm846_vm15, %v1033_v63, 0.0 }
 0x68c   :  { %1220 = vrot.lane.b32.xlu0 %v2241_v32, %s1535_s28  ;;  %1210 = vrot.lane.b32.xlu1 %v2123_v8, %s1535_s28  ;;  %v1052_v8 = vsel %vm869_vm0, %v1042_v54, 0.0 }
 0x690   :  { %1224 = vrot.lane.b32.xlu0 %v2256_v42, %s1535_s28  ;;  %1222 = vrot.lane.b32.xlu1 %v2248_v4, %s1535_s28 }
 0x694   :  { %1226 = vrot.lane.b32.xlu1 %v2266_v50, %s1535_s28 }
 0x6ea   :  { %v1056_v53 = vpop.permute.xlu0 %1055 }
 0x6eb   :  { %v1067_v55 = vsel %vm143_vm1, %v1034_v61, %v1056_v53  ;;  %v1260_v32 = vsel %vm143_vm1, %v994_v22, %v1056_v53 }
 0x6ec   :  { %1271 = vst [vmem:[%s2511_s7 + $0x18] sm:$0xff] %v1260_v32  ;;  %1172 = vmatmul.mubr.f32.vlgmr.msra.gmra.mrb[16].mxu1 %v1067_v55 }
 0x6ed   :  { %1313 = vmatprep.mubr.msk.f32.mxu1 %vm143_vm1, %v1052_v8 }
 0x6ee   :  { %v1058_v4 = vpop.permute.xlu1 %1057 }
 0x6ef   :  { %v1261_v42 = vsel %vm143_vm1, %v999_v27, %v1058_v4  ;;  %v1068_v49 = vsel %vm143_vm1, %v1025_v30, %v1058_v4 }
 0x6f0   :  { %1276 = vst [vmem:[%s2511_s7 + $0x40] sm:$0xff] %v1261_v42  ;;  %1177 = vmatmul.mubr.f32.gmra.mrb[18].mxu1 %v1068_v49 }
 0x6f1   :  { %1314 = vmatprep.mubr.msk.f32.mxu1 %vm143_vm1, %v1044_v3 }
 0x6f2   :  { %v1060_v50 = vpop.permute.xlu0 %1059 }
 0x6f3   :  { %v1262_v51 = vsel %vm143_vm1, %v1004_v40, %v1060_v50  ;;  %v1069_v1 = vsel %vm143_vm1, %v1036_v12, %v1060_v50 }
 0x6f4   :  { %1281 = vst [vmem:[%s2511_s7 + $0x68] sm:$0xff] %v1262_v51  ;;  %1182 = vmatmul.mubr.f32.gmra.mrb[20].mxu1 %v1069_v1 }
 0x6f5   :  { %1315 = vmatprep.mubr.msk.f32.mxu1 %vm143_vm1, %v1054_v13 }
 0x6f6   :  { %v1205_v14 = vpop.permute.xlu0 %1204  ;;  %v1062_v15 = vpop.permute.xlu1 %1061 }
 0x6f7   :  { %v1252_v56 = vsel %vm143_vm1, %v1954_v25, %v1205_v14  ;;  %v1263_v16 = vsel %vm143_vm1, %v1009_v47, %v1062_v15  ;;  %v1070_v17 = vsel %vm143_vm1, %v1028_v11, %v1062_v15 }
 0x6f8   :  { %1269 = vst [vmem:[%s2511_s7 + $0x8] sm:$0xff] %v1252_v56  ;;  %1286 = vst [vmem:[%s2511_s7 + $0x90] sm:$0xff] %v1263_v16  ;;  %1187 = vmatmul.mubr.f32.gmra.mrb[22].mxu1 %v1070_v17 }
 0x6fa   :  { %v1209_v6 = vpop.permute.xlu0 %1208  ;;  %v1207_v18 = vpop.permute.xlu1 %1206 }
 0x6fb   :  { %v1254_v19 = vsel %vm143_vm1, %v1969_v34, %v1209_v6  ;;  %v1253_v25 = vsel %vm143_vm1, %v1961_v29, %v1207_v18 }
 0x6fc   :  { %1279 = vst [vmem:[%s2511_s7 + $0x58] sm:$0xff] %v1254_v19  ;;  %1274 = vst [vmem:[%s2511_s7 + $0x30] sm:$0xff] %v1253_v25 }
 0x6fe   :  { %v1221_v7 = vpop.permute.xlu0 %1220  ;;  %v1211_v20 = vpop.permute.xlu1 %1210 }
 0x6ff   :  { %v1256_v21 = vsel %vm143_vm1, %v2101_v5, %v1221_v7  ;;  %v1255_v22 = vsel %vm143_vm1, %v1979_v41, %v1211_v20 }
 0x700   :  { %1270 = vst [vmem:[%s2511_s7 + $0x10] sm:$0xff] %v1256_v21  ;;  %1284 = vst [vmem:[%s2511_s7 + $0x80] sm:$0xff] %v1255_v22 }
 0x702   :  { %v1225_v29 = vpop.permute.xlu0 %1224  ;;  %v1223_v34 = vpop.permute.xlu1 %1222 }
 0x703   :  { %v1258_v23 = vsel %vm143_vm1, %v2117_v62, %v1225_v29  ;;  %v1257_v24 = vsel %vm143_vm1, %v2108_v57, %v1223_v34 }
 0x704   :  { %1280 = vst [vmem:[%s2511_s7 + $0x60] sm:$0xff] %v1258_v23  ;;  %1275 = vst [vmem:[%s2511_s7 + $0x38] sm:$0xff] %v1257_v24 }
 0x706   :  { %v1227_v41 = vpop.permute.xlu1 %1226 }
 0x707   :  { %v1259_v5 = vsel %vm143_vm1, %v2126_v9, %v1227_v41 }
 0x708   :  { %1285 = vst [vmem:[%s2511_s7 + $0x88] sm:$0xff] %v1259_v5 }
 0x7bf   :  { %v1173_v62 = vpop.f32.mrb[16].mxu1 }
 0x7c0   :  { %v1192_v27 = vadd.f32 %v1173_v62, %v2245_v33  ;;  %v1175_v57 = vpop.f32.mrb[17].mxu1 }
 0x7c2   :  { %v1196_v28 = vmax.f32 %v1192_v27, 0.0 }
 0x7c3   :  { %v1178_v31 = vpop.f32.mrb[18].mxu1 }
 0x7c4   :  { %v1193_v0 = vadd.f32 %v1178_v31, %v2252_v37  ;;  %1236 = vrot.lane.b32.xlu0 %v1196_v28, %s1535_s28  ;;  %v1180_v36 = vpop.f32.mrb[19].mxu1 }
 0x7c6   :  { %v1197_v38 = vmax.f32 %v1193_v0, 0.0 }
 0x7c7   :  { %v1183_v39 = vpop.f32.mrb[20].mxu1 }
 0x7c8   :  { %v1194_v40 = vadd.f32 %v1183_v39, %v2260_v43  ;;  %1238 = vrot.lane.b32.xlu1 %v1197_v38, %s1535_s28  ;;  %v1185_v9 = vpop.f32.mrb[21].mxu1 }
 0x7ca   :  { %v1198_v26 = vmax.f32 %v1194_v40, 0.0 }
 0x7cb   :  { %v1188_v44 = vpop.f32.mrb[22].mxu1 }
 0x7cc   :  { %v1195_v2 = vadd.f32 %v1188_v44, %v2271_v35  ;;  %1240 = vrot.lane.b32.xlu0 %v1198_v26, %s1535_s28  ;;  %v1190_v33 = vpop.f32.mrb[23].mxu1 }
 0x7ce   :  { %v1199_v30 = vmax.f32 %v1195_v2, 0.0 }
 0x7d0   :  { %1242 = vrot.lane.b32.xlu1 %v1199_v30, %s1535_s28 }
 0x836   :  { %v1237_v37 = vpop.permute.xlu0 %1236 }
 0x837   :  { %v1264_v45 = vsel %vm143_vm1, %v1173_v62, %v1237_v37 }
 0x838   :  { %1272 = vst [vmem:[%s2511_s7 + $0x20] sm:$0xff] %v1264_v45 }
 0x83a   :  { %v1239_v43 = vpop.permute.xlu1 %1238 }
 0x83b   :  { %v1265_v46 = vsel %vm143_vm1, %v1178_v31, %v1239_v43 }
 0x83c   :  { %1277 = vst [vmem:[%s2511_s7 + $0x48] sm:$0xff] %v1265_v46 }
 0x83e   :  { %v1241_v35 = vpop.permute.xlu0 %1240 }
 0x83f   :  { %v1266_v47 = vsel %vm143_vm1, %v1183_v39, %v1241_v35 }
 0x840   :  { %1282 = vst [vmem:[%s2511_s7 + $0x70] sm:$0xff] %v1266_v47 }
 0x842   :  { %v1243_v48 = vpop.permute.xlu1 %1242 }
 0x843   :  { %v1267_v52 = vsel %vm143_vm1, %v1188_v44, %v1243_v48 }
 0x844   :  { %1287 = vst [vmem:[%s2511_s7 + $0x98] sm:$0xff] %v1267_v52 }

</bundles_post_ra>
